<compile_context>
chip_gen: v7x
topology: tpu7x:2x2x1
jax: 0.10.0
libtpu: 0.0.40
codegen_flags: <defaults>
</compile_context>

<pallas_src>
import numpy as np
import jax
import jax.numpy as jnp
from jax.experimental import pallas as pl
from jax.experimental.pallas import tpu as pltpu


# ----------------------------- Pallas kernels --------------------------------

def gcn_layer_kernel(kwin_ref, adj_ref, h_ref, w_ref, b_ref,
                     dinv_k_ref, dinv_i_ref, out_ref, acc_ref):
    """out[i] = relu(d_i^-1/2 * sum_k A_bin[i,k] @ (d_k^-1/2 * (H[k] @ W)) + b).

    Grid = (row_blocks, window_k).  kwin_ref (scalar prefetch) shifts the k axis
    to each row block's nonzero column-block window (block-diagonal graphs).
    """
    k = pl.program_id(1)

    @pl.when(k == 0)
    def _():
        acc_ref[...] = jnp.zeros_like(acc_ref)

    # Fused feature transform for this k block (W is VMEM-resident), then apply
    # the column-side normalization d_j^-1/2 and drop to bf16 for the MXU.
    hw = jnp.dot(h_ref[...], w_ref[...], preferred_element_type=jnp.float32)
    hw = (hw * dinv_k_ref[...]).astype(jnp.bfloat16)

    # Exact binary int8 adjacency tile -> bf16 (0/1 exactly representable).
    adj = adj_ref[...].astype(jnp.float32).astype(jnp.bfloat16)
    acc_ref[...] += jnp.dot(adj, hw, preferred_element_type=jnp.float32)

    @pl.when(k == pl.num_programs(1) - 1)
    def _():
        out_ref[...] = jnp.maximum(
            acc_ref[...] * dinv_i_ref[...] + b_ref[...], 0.0
        ).astype(out_ref.dtype)


def gcn_layer_head_kernel(kwin_ref, adj_ref, h_ref, w_ref, b_ref,
                          dinv_k_ref, dinv_i_ref, pool_ref, wout_ref,
                          out_ref, acc_ref):
    """Layer-2 aggregate fused with mean-pool + output Linear.

    Finalize emits a per-row-block partial logits block:
        out[i] = pool[:, i_block] @ (relu(d_i^-1/2 * acc + b) @ Wout)
    Per-row-block partials keep the row axis safely "parallel"; they are summed
    with a trivial XLA reduce outside the kernel.  h2 never touches HBM.
    """
    k = pl.program_id(1)

    @pl.when(k == 0)
    def _():
        acc_ref[...] = jnp.zeros_like(acc_ref)

    hw = jnp.dot(h_ref[...], w_ref[...], preferred_element_type=jnp.float32)
    hw = (hw * dinv_k_ref[...]).astype(jnp.bfloat16)
    adj = adj_ref[...].astype(jnp.float32).astype(jnp.bfloat16)
    acc_ref[...] += jnp.dot(adj, hw, preferred_element_type=jnp.float32)

    @pl.when(k == pl.num_programs(1) - 1)
    def _():
        h_blk = jnp.maximum(acc_ref[...] * dinv_i_ref[...] + b_ref[...], 0.0)
        blk_logits = jnp.dot(h_blk.astype(jnp.bfloat16), wout_ref[...],
                             preferred_element_type=jnp.float32)
        out_ref[...] = jnp.dot(pool_ref[...], blk_logits,
                               preferred_element_type=jnp.float32)[None]


# ------------------------- pallas_call wrappers -------------------------------

def gcn_layer(adj, h, w, b, dinv, kwin, max_klen, row_block, k_block):
    n_pad = adj.shape[0]
    f_in = h.shape[1]
    hp = w.shape[1]
    n_row = n_pad // row_block
    flops = int(2 * n_row * max_klen * k_block * hp * (row_block + f_in))
    bytes_accessed = int(
        n_row * max_klen * (row_block * k_block                      # int8 adj
                            + k_block * f_in * h.dtype.itemsize)     # H blocks
        + n_pad * hp * 2)                                            # bf16 out
    return pl.pallas_call(
        gcn_layer_kernel,
        out_shape=jax.ShapeDtypeStruct((n_pad, hp), jnp.bfloat16),
        grid_spec=pltpu.PrefetchScalarGridSpec(
            num_scalar_prefetch=1,
            grid=(n_row, max_klen),
            in_specs=[
                pl.BlockSpec((row_block, k_block), lambda i, k, kw: (i, kw[i] + k)),
                pl.BlockSpec((k_block, f_in), lambda i, k, kw: (kw[i] + k, 0)),
                pl.BlockSpec((f_in, hp), lambda i, k, kw: (0, 0)),
                pl.BlockSpec((1, hp), lambda i, k, kw: (0, 0)),
                pl.BlockSpec((k_block, 1), lambda i, k, kw: (kw[i] + k, 0)),
                pl.BlockSpec((row_block, 1), lambda i, k, kw: (i, 0)),
            ],
            out_specs=pl.BlockSpec((row_block, hp), lambda i, k, kw: (i, 0)),
            scratch_shapes=[pltpu.VMEM((row_block, hp), jnp.float32)],
        ),
        compiler_params=pltpu.CompilerParams(
            dimension_semantics=("parallel", "arbitrary")),
        cost_estimate=pl.CostEstimate(
            flops=flops, transcendentals=0, bytes_accessed=bytes_accessed),
    )(kwin, adj, h, w, b, dinv, dinv)


def gcn_layer_with_head(adj, h, w, b, dinv, pool, wout, kwin, max_klen,
                        row_block, k_block):
    n_pad = adj.shape[0]
    f_in = h.shape[1]
    hp = w.shape[1]
    g = pool.shape[0]
    c = wout.shape[1]
    n_row = n_pad // row_block
    flops = int(2 * n_row * max_klen * k_block * hp * (row_block + f_in)
                + 2 * n_row * row_block * hp * c
                + 2 * n_row * g * row_block * c)
    bytes_accessed = int(
        n_row * max_klen * (row_block * k_block
                            + k_block * f_in * h.dtype.itemsize)
        + g * n_pad * 4 + n_row * g * c * 4)
    return pl.pallas_call(
        gcn_layer_head_kernel,
        out_shape=jax.ShapeDtypeStruct((n_row, g, c), jnp.float32),
        grid_spec=pltpu.PrefetchScalarGridSpec(
            num_scalar_prefetch=1,
            grid=(n_row, max_klen),
            in_specs=[
                pl.BlockSpec((row_block, k_block), lambda i, k, kw: (i, kw[i] + k)),
                pl.BlockSpec((k_block, f_in), lambda i, k, kw: (kw[i] + k, 0)),
                pl.BlockSpec((f_in, hp), lambda i, k, kw: (0, 0)),
                pl.BlockSpec((1, hp), lambda i, k, kw: (0, 0)),
                pl.BlockSpec((k_block, 1), lambda i, k, kw: (kw[i] + k, 0)),
                pl.BlockSpec((row_block, 1), lambda i, k, kw: (i, 0)),
                pl.BlockSpec((g, row_block), lambda i, k, kw: (0, i)),
                pl.BlockSpec((hp, c), lambda i, k, kw: (0, 0)),
            ],
            out_specs=pl.BlockSpec((1, g, c), lambda i, k, kw: (i, 0, 0)),
            scratch_shapes=[pltpu.VMEM((row_block, hp), jnp.float32)],
        ),
        compiler_params=pltpu.CompilerParams(
            dimension_semantics=("parallel", "arbitrary")),
        cost_estimate=pl.CostEstimate(
            flops=flops, transcendentals=0, bytes_accessed=bytes_accessed),
    )(kwin, adj, h, w, b, dinv, dinv, pool, wout)


# ------------------------------ host-side glue --------------------------------

def build_graph_operators(edge_index, batch, num_graphs, row_block, k_block):
    """Exact binary (A + I) in int8, factored D^-1/2 scales, mean-pool matrix,
    and per-row-block nonzero column-block windows (host-side preprocessing)."""
    edge_index = np.asarray(edge_index)
    batch = np.asarray(batch)
    n = batch.shape[0]
    blk = max(row_block, k_block)
    n_pad = ((n + blk - 1) // blk) * blk
    n_row = n_pad // row_block
    n_k = n_pad // k_block

    # Binary adjacency with self loops (GCNConv's add_remaining_self_loops).
    a = np.zeros((n, n), np.float32)
    a[edge_index[0], edge_index[1]] = 1.0
    np.fill_diagonal(a, 1.0)
    deg = a.sum(axis=1)
    dinv = np.where(deg > 0, 1.0 / np.sqrt(deg), 0.0).astype(np.float32)

    adj = np.zeros((n_pad, n_pad), np.int8)
    adj[:n, :n] = a.astype(np.int8)
    dinv_pad = np.zeros((n_pad, 1), np.float32)
    dinv_pad[:n, 0] = dinv

    # Row-normalized pooling matrix: global_mean_pool == pool @ h.
    onehot = (batch[None, :] == np.arange(num_graphs)[:, None]).astype(np.float32)
    counts = np.maximum(onehot.sum(axis=1, keepdims=True), 1.0)
    pool = np.zeros((num_graphs, n_pad), np.float32)
    pool[:, :n] = onehot / counts

    # Per-row-block contiguous window of (possibly) nonzero column blocks.
    blk_nz = (adj.reshape(n_row, row_block, n_k, k_block) != 0).any(axis=(1, 3))
    kstart = np.zeros(n_row, np.int64)
    kend = np.ones(n_row, np.int64)
    for i in range(n_row):
        nz = np.nonzero(blk_nz[i])[0]
        if nz.size:
            kstart[i] = nz[0]
            kend[i] = nz[-1] + 1
    max_klen = int((kend - kstart).max())
    # Clamp so every window stays in bounds; extra blocks covered are all-zero.
    kwin = np.minimum(kstart, n_k - max_klen).astype(np.int32)
    return adj, pool, dinv_pad, kwin, max_klen, n_pad


def _pad2d(a, shape, dtype):
    out = jnp.zeros(shape, dtype)
    return out.at[: a.shape[0], : a.shape[1]].set(a.astype(dtype))


def gcn_forward(x, edge_index, batch, params, num_graphs, *,
                row_block=256, k_block=512):
    """Mirrors GCN.forward(x, edge_index, batch) in eval mode."""
    w1, b1, w2, b2, wout, bout = params
    n, f_in = x.shape
    hidden = w1.shape[1]
    n_classes = wout.shape[1]
    assert k_block % row_block == 0 or row_block % k_block == 0

    adj_np, pool_np, dinv_np, kwin_np, max_klen, n_pad = build_graph_operators(
        edge_index, batch, num_graphs, row_block, k_block)

    adj = jnp.asarray(adj_np)                 # int8 exact binary (A + I)
    pool = jnp.asarray(pool_np)               # (G, n_pad) f32 mean-pool matrix
    dinv = jnp.asarray(dinv_np)               # (n_pad, 1) f32 D^-1/2
    kwin = jnp.asarray(kwin_np, jnp.int32)

    hp = ((hidden + 127) // 128) * 128        # lane-dense hidden (64 -> 128)

    x_pad = _pad2d(x, (n_pad, f_in), jnp.bfloat16)
    w1p = _pad2d(w1, (f_in, hp), jnp.bfloat16)
    b1p = _pad2d(b1, (1, hp), jnp.float32)
    w2p = _pad2d(w2, (hp, hp), jnp.bfloat16)
    b2p = _pad2d(b2, (1, hp), jnp.float32)
    woutp = _pad2d(wout, (hp, n_classes), jnp.bfloat16)

    # GCNConv 1: relu(D^-1/2 (A+I) D^-1/2 (X @ W1) + b1); dropout(eval) = identity.
    h1 = gcn_layer(adj, x_pad, w1p, b1p, dinv, kwin, max_klen, row_block, k_block)

    # GCNConv 2 + ReLU + global_mean_pool + Linear, fully fused; per-row-block
    # partial logits are reduced with a trivial XLA sum (h2 never hits HBM).
    partials = gcn_layer_with_head(adj, h1, w2p, b2p, dinv, pool, woutp,
                                   kwin, max_klen, row_block, k_block)
    return partials.sum(axis=0) + bout


# ------------------------------ pure-JAX reference ----------------------------

def gcn_reference(x, edge_index, batch, params, num_graphs):
    w1, b1, w2, b2, wout, bout = params
    n = x.shape[0]
    a = jnp.zeros((n, n), jnp.float32).at[edge_index[0], edge_index[1]].set(1.0)
    a = a.at[jnp.arange(n), jnp.arange(n)].set(1.0)
    deg = a.sum(axis=1)
    dinv = jnp.where(deg > 0, 1.0 / jnp.sqrt(deg), 0.0)
    a_hat = a * dinv[:, None] * dinv[None, :]
    h1 = jnp.maximum(a_hat @ (x @ w1) + b1, 0.0)
    h2 = jnp.maximum(a_hat @ (h1 @ w2) + b2, 0.0)
    onehot = (batch[None, :] == jnp.arange(num_graphs)[:, None]).astype(jnp.float32)
    pooled = (onehot @ h2) / jnp.maximum(onehot.sum(1, keepdims=True), 1.0)
    return pooled @ wout + bout


# -------------------------------- Example -------------------------------------

if __name__ == "__main__":
    key = jax.random.PRNGKey(0)

    # Shapes consistent with the module: OneHotDegree(135) -> 136 node features,
    # hidden_channels=64, 2 classes (IMDB-BINARY).  Features are random stand-ins.
    num_node_features = 136
    hidden = 64
    num_classes = 2
    num_graphs = 3
    nodes_per_graph = 200
    N = num_graphs * nodes_per_graph          # 600 -> padded to 1024

    k_feat, k_adj, k_w1, k_w2, k_wo = jax.random.split(key, 5)

    # Node features.
    x = jax.random.normal(k_feat, (N, num_node_features), jnp.float32)

    # Graph assignment vector and block-diagonal random undirected graph
    # (edge_index in PyG convention: both directions present, no self loops).
    batch = jnp.repeat(jnp.arange(num_graphs, dtype=jnp.int32), nodes_per_graph)
    same_graph = batch[:, None] == batch[None, :]
    rnd = jax.random.bernoulli(k_adj, 0.2, (N, N))
    a = jnp.logical_and(jnp.logical_or(rnd, rnd.T), same_graph)
    a = jnp.logical_and(a, ~jnp.eye(N, dtype=bool))
    rows, cols = jnp.nonzero(a)
    edge_index = jnp.stack([rows, cols]).astype(jnp.int32)    # [2, E]

    # Deterministic parameter init (stored [in, out] so kernels do x @ W).
    def glorot(k, shape):
        lim = jnp.sqrt(6.0 / (shape[0] + shape[1]))
        return jax.random.uniform(k, shape, jnp.float32, -lim, lim)

    w1 = glorot(k_w1, (num_node_features, hidden))
    b1 = jnp.zeros((1, hidden), jnp.float32)
    w2 = glorot(k_w2, (hidden, hidden))
    b2 = jnp.zeros((1, hidden), jnp.float32)
    wout = glorot(k_wo, (hidden, num_classes))
    bout = jnp.zeros((1, num_classes), jnp.float32)
    params = (w1, b1, w2, b2, wout, bout)

    out = gcn_forward(x, edge_index, batch, params, num_graphs)
    out = jax.block_until_ready(out)

    assert out.shape == (num_graphs, num_classes)
    assert jnp.all(jnp.isfinite(out))

    ref = gcn_reference(x, edge_index, batch, params, num_graphs)
    assert jnp.allclose(out, ref, atol=5e-2, rtol=1e-1), (out, ref)

    print("KERNEL_OK")
</pallas_src>

<mosaic_0001>
module attributes {stable_mosaic.version = 11 : i64} {
  func.func @gcn_layer_kernel(%arg0: i32, %arg1: i32, %arg2: memref<4xi32, #tpu.memory_space<smem>>, %arg3: memref<256x512xi8, #tpu.memory_space<vmem>>, %arg4: memref<512x136xbf16, #tpu.memory_space<vmem>>, %arg5: memref<136x128xbf16, #tpu.memory_space<vmem>>, %arg6: memref<1x128xf32, #tpu.memory_space<vmem>>, %arg7: memref<512x1xf32, #tpu.memory_space<vmem>>, %arg8: memref<256x1xf32, #tpu.memory_space<vmem>>, %arg9: memref<256x128xbf16, #tpu.memory_space<vmem>>, %arg10: memref<256x128xf32, #tpu.memory_space<vmem>>) attributes {dimension_semantics = [#tpu.dimension_semantics<parallel>, #tpu.dimension_semantics<arbitrary>], iteration_bounds = array<i64: 4, 2>, scalar_prefetch = 1 : i64, scratch_operands = 1 : i64, tpu.core_type = #tpu.core_type<tc>, window_params = [{transform_indices = @transform_0, window_bounds = array<i64: 256, 512>}, {transform_indices = @transform_1, window_bounds = array<i64: 512, 136>}, {pipeline_mode = #tpu.pipeline_mode<synchronous>, transform_indices = @transform_2, window_bounds = array<i64: 136, 128>}, {pipeline_mode = #tpu.pipeline_mode<synchronous>, transform_indices = @transform_3, window_bounds = array<i64: 1, 128>}, {transform_indices = @transform_4, window_bounds = array<i64: 512, 1>}, {transform_indices = @transform_5, window_bounds = array<i64: 256, 1>}, {transform_indices = @transform_6, window_bounds = array<i64: 256, 128>}]} {
    %c0_i32 = arith.constant 0 : i32
    %0 = arith.cmpi eq, %arg1, %c0_i32 : i32
    %1 = arith.extui %0 : i1 to i32
    %c0_i32_0 = arith.constant 0 : i32
    %2 = arith.cmpi ne, %1, %c0_i32_0 : i32
    scf.if %2 {
      %cst_14 = arith.constant 0.000000e+00 : f32
      %20 = vector.broadcast %cst_14 : f32 to vector<256x128xf32>
      %c0_15 = arith.constant 0 : index
      %c0_16 = arith.constant 0 : index
      %21 = vector.load %arg10[%c0_15, %c0_16] : memref<256x128xf32, #tpu.memory_space<vmem>>, vector<256x128xf32>
      tpu.vector_store %arg10[%c0_15, %c0_16], %20 {strides = array<i32>} : memref<256x128xf32, #tpu.memory_space<vmem>>, vector<256x128xf32>,
    } else {
    }
    %c0 = arith.constant 0 : index
    %c0_1 = arith.constant 0 : index
    %3 = vector.load %arg4[%c0, %c0_1] : memref<512x136xbf16, #tpu.memory_space<vmem>>, vector<512x136xbf16>
    %c0_2 = arith.constant 0 : index
    %c0_3 = arith.constant 0 : index
    %4 = vector.load %arg5[%c0_2, %c0_3] : memref<136x128xbf16, #tpu.memory_space<vmem>>, vector<136x128xbf16>
    %cst = arith.constant dense<0.000000e+00> : vector<512x128xf32>
    %5 = tpu.matmul %3, %4, %cst {dimension_numbers = #tpu.dot_dimension_numbers<[1], [0], [0], [1], [0, 0, 1, 1], [], []>} : vector<512x136xbf16>, vector<136x128xbf16>, vector<512x128xf32> -> vector<512x128xf32>
    %c0_4 = arith.constant 0 : index
    %c0_5 = arith.constant 0 : index
    %6 = vector.load %arg7[%c0_4, %c0_5] : memref<512x1xf32, #tpu.memory_space<vmem>>, vector<512x1xf32>
    %7 = vector.broadcast %6 : vector<512x1xf32> to vector<512x128xf32>
    %8 = arith.mulf %5, %7 : vector<512x128xf32>
    %9 = arith.truncf %8 : vector<512x128xf32> to vector<512x128xbf16>
    %c0_6 = arith.constant 0 : index
    %c0_7 = arith.constant 0 : index
    %10 = vector.load %arg3[%c0_6, %c0_7] : memref<256x512xi8, #tpu.memory_space<vmem>>, vector<256x512xi8>
    %11 = arith.sitofp %10 : vector<256x512xi8> to vector<256x512xf32>
    %12 = arith.truncf %11 : vector<256x512xf32> to vector<256x512xbf16>
    %c0_8 = arith.constant 0 : index
    %c0_9 = arith.constant 0 : index
    %13 = vector.load %arg10[%c0_8, %c0_9] : memref<256x128xf32, #tpu.memory_space<vmem>>, vector<256x128xf32>
    %cst_10 = arith.constant dense<0.000000e+00> : vector<256x128xf32>
    %14 = tpu.matmul %12, %9, %cst_10 {dimension_numbers = #tpu.dot_dimension_numbers<[1], [0], [0], [1], [0, 0, 1, 1], [], []>} : vector<256x512xbf16>, vector<512x128xbf16>, vector<256x128xf32> -> vector<256x128xf32>
    %15 = arith.addf %13, %14 : vector<256x128xf32>
    %c0_11 = arith.constant 0 : index
    %c0_12 = arith.constant 0 : index
    %16 = vector.load %arg10[%c0_11, %c0_12] : memref<256x128xf32, #tpu.memory_space<vmem>>, vector<256x128xf32>
    tpu.vector_store %arg10[%c0_11, %c0_12], %15 {strides = array<i32>} : memref<256x128xf32, #tpu.memory_space<vmem>>, vector<256x128xf32>,
    %c1_i32 = arith.constant 1 : i32
    %17 = arith.cmpi eq, %arg1, %c1_i32 : i32
    %18 = arith.extui %17 : i1 to i32
    %c0_i32_13 = arith.constant 0 : i32
    %19 = arith.cmpi ne, %18, %c0_i32_13 : i32
    scf.if %19 {
      %c0_14 = arith.constant 0 : index
      %c0_15 = arith.constant 0 : index
      %20 = vector.load %arg10[%c0_14, %c0_15] : memref<256x128xf32, #tpu.memory_space<vmem>>, vector<256x128xf32>
      %c0_16 = arith.constant 0 : index
      %c0_17 = arith.constant 0 : index
      %21 = vector.load %arg8[%c0_16, %c0_17] : memref<256x1xf32, #tpu.memory_space<vmem>>, vector<256x1xf32>
      %22 = vector.broadcast %21 : vector<256x1xf32> to vector<256x128xf32>
      %23 = arith.mulf %20, %22 : vector<256x128xf32>
      %c0_18 = arith.constant 0 : index
      %c0_19 = arith.constant 0 : index
      %24 = vector.load %arg6[%c0_18, %c0_19] : memref<1x128xf32, #tpu.memory_space<vmem>>, vector<1x128xf32>
      %25 = vector.broadcast %24 : vector<1x128xf32> to vector<256x128xf32>
      %26 = arith.addf %23, %25 : vector<256x128xf32>
      %cst_20 = arith.constant 0.000000e+00 : f32
      %27 = vector.broadcast %cst_20 : f32 to vector<256x128xf32>
      %28 = arith.maximumf %26, %27 : vector<256x128xf32>
      %29 = arith.truncf %28 : vector<256x128xf32> to vector<256x128xbf16>
      %c0_21 = arith.constant 0 : index
      %c0_22 = arith.constant 0 : index
      %30 = vector.load %arg9[%c0_21, %c0_22] : memref<256x128xbf16, #tpu.memory_space<vmem>>, vector<256x128xbf16>
      tpu.vector_store %arg9[%c0_21, %c0_22], %29 {strides = array<i32>} : memref<256x128xbf16, #tpu.memory_space<vmem>>, vector<256x128xbf16>,
    } else {
    }
    return
  }
  func.func @transform_0(%arg0: i32, %arg1: i32, %arg2: memref<4xi32, #tpu.memory_space<smem>>) -> (i32, i32) {
    %0 = arith.index_cast %arg0 : i32 to index
    %1 = memref.load %arg2[%0] : memref<4xi32, #tpu.memory_space<smem>>
    %2 = arith.addi %1, %arg1 : i32
    %c0_i32 = arith.constant 0 : i32
    return %arg0, %2 : i32, i32
  }
  func.func @transform_1(%arg0: i32, %arg1: i32, %arg2: memref<4xi32, #tpu.memory_space<smem>>) -> (i32, i32) {
    %0 = arith.index_cast %arg0 : i32 to index
    %1 = memref.load %arg2[%0] : memref<4xi32, #tpu.memory_space<smem>>
    %2 = arith.addi %1, %arg1 : i32
    %c0_i32 = arith.constant 0 : i32
    %c0_i32_0 = arith.constant 0 : i32
    return %2, %c0_i32 : i32, i32
  }
  func.func @transform_2(%arg0: i32, %arg1: i32, %arg2: memref<4xi32, #tpu.memory_space<smem>>) -> (i32, i32) {
    %c0_i32 = arith.constant 0 : i32
    %c0_i32_0 = arith.constant 0 : i32
    %c0_i32_1 = arith.constant 0 : i32
    return %c0_i32, %c0_i32_0 : i32, i32
  }
  func.func @transform_3(%arg0: i32, %arg1: i32, %arg2: memref<4xi32, #tpu.memory_space<smem>>) -> (i32, i32) {
    %c0_i32 = arith.constant 0 : i32
    %c0_i32_0 = arith.constant 0 : i32
    %c0_i32_1 = arith.constant 0 : i32
    return %c0_i32, %c0_i32_0 : i32, i32
  }
  func.func @transform_4(%arg0: i32, %arg1: i32, %arg2: memref<4xi32, #tpu.memory_space<smem>>) -> (i32, i32) {
    %0 = arith.index_cast %arg0 : i32 to index
    %1 = memref.load %arg2[%0] : memref<4xi32, #tpu.memory_space<smem>>
    %2 = arith.addi %1, %arg1 : i32
    %c0_i32 = arith.constant 0 : i32
    %c0_i32_0 = arith.constant 0 : i32
    return %2, %c0_i32 : i32, i32
  }
  func.func @transform_5(%arg0: i32, %arg1: i32, %arg2: memref<4xi32, #tpu.memory_space<smem>>) -> (i32, i32) {
    %c0_i32 = arith.constant 0 : i32
    %c0_i32_0 = arith.constant 0 : i32
    return %arg0, %c0_i32 : i32, i32
  }
  func.func @transform_6(%arg0: i32, %arg1: i32, %arg2: memref<4xi32, #tpu.memory_space<smem>>) -> (i32, i32) {
    %c0_i32 = arith.constant 0 : i32
    %c0_i32_0 = arith.constant 0 : i32
    return %arg0, %c0_i32 : i32, i32
  }
}

</mosaic_0001>

<bundles_post_ra>
// kernel: tpu_custom_call.1
= control target key start
LH: loop header
LB: loop body
LE: loop exit
PB: predicated region body
PF: predicated region fallthrough
CT: control target
= control target key end

     0   :  { %s4740_s0 = inlined_call_operand.vmem [shape: s32[4], index: 0, kind: input, shape index: {}]   ;;  %s4741_s1 = inlined_call_operand.vmem [shape: s8[1024,1024], index: 1, kind: input, shape index: {}]   ;;  %s4742_s2 = inlined_call_operand.vmem [shape: bf16[1024,136], index: 2, kind: input, shape index: {}]   ;;  %s4743_s3 = inlined_call_operand.vmem [shape: bf16[136,128], index: 3, kind: input, shape index: {}]   ;;  %s4744_s4 = inlined_call_operand.vmem [shape: f32[1,128], index: 4, kind: input, shape index: {}]   ;;  %s4745_s5 = inlined_call_operand.vmem [shape: f32[1024,1], index: 5, kind: input, shape index: {}]   ;;  %s4746_s6 = inlined_call_operand.vmem [shape: f32[1024,1], index: 6, kind: input, shape index: {}]   ;;  %s4747_s7 = inlined_call_operand.hbm [shape: bf16[1024,128], index: 7, kind: output, shape index: {}]  }
   0x1   :  { %4755 = sst [smem:[#allocation16_spill]] %s4741_s1  ;;  %s12_s26 = sshll.u32 %s4740_s0, 4  ;;  %s13_s26 = int_to_ptr.vmem [resolvable:$true] %s12_s26 }
   0x2   :  { %4756 = sst [smem:[#allocation17_spill]] %s4744_s4  ;;  %s3649_s27 = scalar_lea.vmem %s13_s26, 16 }
   0x3   :  { %4757 = sst [smem:[#allocation18_spill]] %s4747_s7  ;;  %p3650_p0 = scmp.ne.s32.totalorder %s13_s26, %s3649_s27 }
   0x4   :  { %p3654_p1 = scmp.lt.s32.totalorder %s13_s26, %s13_s26  ;;  %p3655_p2 = scmp.lt.s32.totalorder %s3649_s27, %s3649_s27 }
   0x6   :  { %p3656_p3 = por %p3655_p2, %p3654_p1 }
   0x8   :  { %p3657_p4 = pnand %p3656_p3, %p3650_p0 }
   0xa   :  { %3660 = shalt.err (!%p3657_p4)  }
   0xb   :  { %s3775_s28 = smov [#allocation4]  }
   0xc   :  { %15 = dma.vmem_to_smem %s13_s26, 16, %s3775_s28, [#allocation3] }
   0xd   :  { %3729 = dma.done.wait [#allocation3], 16 }
   0xe   :  { %3730 = vsyncadd [#allocation3], 4294967280 }
   0xf   :  { %17 = sfence }
  0x10   :  { %18 = vsyncpa [#allocation7], 0 }
  0x11   :  { %20 = vsyncpa [#allocation7 + $0x1], 0  ;;  %s3825_s29 = smov 0   ;;  %s3827_s30 = smov 0  }
  0x12   :  { %s3829_s0 = smov 0   ;;  %s3831_s8 = smov 0  }
  0x13   :  { %s3833_s9 = smov 0   ;;  %s3835_s10 = smov 0  }
  0x14   :  { %s3837_s11 = smov 0   ;;  %s3839_s12 = smov 0  }
  0x15   :  { %s3841_s13 = smov 0   ;;  %s3843_s14 = smov 0  }
  0x16 LB: > { %4758 = sst [smem:[#allocation10_spill]] %s3737_s29  ;;  %s2929_s15 = sadd.s32 4294967295, %s3773_s14   ;;  %s3773_s14 = sphi %s3843_s14, %s26_s14   ;;  %s3769_s13 = sphi %s3841_s13, %s4776_s13   ;;  %s3765_s12 = sphi %s3839_s12, %s4775_s12   ;;  %s3761_s11 = sphi %s3837_s11, %s4774_s11   ;;  %s3757_s10 = sphi %s3835_s10, %s4773_s10   ;;  %s3753_s9 = sphi %s3833_s9, %s4781_s9   ;;  %s3749_s8 = sphi %s3831_s8, %s4780_s8   ;;  %s3745_s0 = sphi %s3829_s0, %s4779_s0   ;;  %s3741_s30 = sphi %s3827_s30, %s4778_s30   ;;  %s3737_s29 = sphi %s3825_s29, %s4777_s29  }
  0x17   : > { %4759 = sst [smem:[#allocation11_spill]] %s3765_s12  ;;  %s35_s16 = sadd.s32 1, %s3765_s12 }
  0x18   : > { %4760 = sst [smem:[#allocation12_spill]] %s3769_s13  ;;  %p36_p5 = scmp.ge.s32.totalorder %s35_s16, 2 }
  0x19   : > { %s38_s17 = sadd.s32 1, %s3769_s13  ;;  %s2930_s18 = sadd.s32 4294967294, %s3773_s14  }
  0x1a   : > { %p58_p6 = scmp.ne.s32.totalorder %s3753_s9, %s3749_s8  ;;  %s4783_s16 = smov (%p36_p5, %s35_s16), 0 }
  0x1b   : > { %4761 = sst [smem:[#allocation13_spill]] %s4783_s16  ;;  %s4785_s17 = smov (!%p36_p5, %s38_s17), %s3769_s13 }
  0x1c   : > { %s42_s19 = sld [smem:[#allocation4 + %s3769_s13]]  ;;  %p59_p7 = scmp.eq.s32.totalorder %s3773_s14, 0 }
  0x1d   : > { %p40_p8 = scmp.ge.s32.totalorder %s4785_s17, 4  ;;  %s205_s20 = sadd.s32 1, %s3745_s0 }
  0x1e   : > { %p3887_p9 = por %p59_p7, %p58_p6  ;;  %p215_p10 = scmp.ne.s32.totalorder %s3745_s0, %s3741_s30 }
  0x1f   : > { %s4787_s17 = smov (%p40_p8, %s4785_s17), 0  ;;  %p216_p11 = scmp.eq.s32.totalorder %s2929_s15, 7 }
  0x20   : > { %4763 = sst [smem:[#allocation14_spill]] %s4787_s17  ;;  %p221_p12 = scmp.ne.s32.totalorder %s3741_s30, %s3737_s29 }
  0x21   : > { %s44_s22 = sld [smem:[#allocation4 + %s4787_s17]]  ;;  %s46_s23 = ssub.s32 %s3769_s13, %s4787_s17 }
  0x22   : > { %p203_p13 = scmp.eq.s32.totalorder %s46_s23, 0  ;;  %p3900_p0 = por %p216_p11, %p215_p10 }
  0x23   : > { %p222_p1 = scmp.eq.s32.totalorder %s2930_s18, 7  ;;  %s43_s26 = sadd.s32 %s3765_s12, %s42_s19 }
  0x24   : > { %s3905_s25 = scalar_select %p203_p13, %s3745_s0, %s205_s20  }
  0x25   : > { %p3908_p2 = por %p222_p1, %p221_p12  ;;  %s51_s15 = sadd.s32 1, %s3753_s9 }
  0x26   : > { %p2932_p4 = scmp.ge.s32.totalorder %s3773_s14, 8 }
  0x27   : > { %s45_s28 = sadd.s32 %s44_s22, %s4783_s16 }
  0x28   : > { %s47_s7 = ssub.s32 %s43_s26, %s45_s28  ;;  %244 = sbr.rel (%p2932_p4) target bundleno = 75 (0x4b), region = 24 }
  0x29   : > { %s48_s4 = sor.u32 %s47_s7, %s46_s23 }
  0x2a   : > { %p49_p3 = scmp.eq.s32.totalorder %s48_s4, 0 }
  0x2c   : > { %s3915_s29 = scalar_select %p49_p3, %s3753_s9, %s51_s15  }
  0x2e   : > { %4766 = sst [smem:[#allocation15_spill]] %s3915_s29 }
  0x2f   : > { %247 = sbr.rel (!%p3887_p9) target bundleno = 75 (0x4b), region = 28  ;;  %s252_s18 = sld [smem:[#allocation4 + %s3769_s13]] (%p3887_p9) }
  0x30   : > { %s249_s19 = sand.u32 (%p3887_p9), 1, %s3753_s9   ;;  %s3093_s20 = sshll.u32 (%p3887_p9), %s3769_s13, 6 }
  0x31   : > { %s2933_s22 = sshll.u32 (%p3887_p9), %s249_s19, 8  ;;  %s4767_s1 = sld [smem:[#allocation16_spill]] (%p3887_p9) }
  0x32   : > { %s3932_s21 = scalar_lea.vmem (%p3887_p9), [#allocation5], %s2933_s22 }
  0x35   : > { %s253_s26 = sadd.s32 (%p3887_p9), %s3765_s12, %s252_s18 }
  0x36   : > { %s2935_s7 = sshll.u32 %s253_s26, 2 }
  0x37   : > { %s257_s23 = sadd.s32 %s3093_s20, %s2935_s7 }
  0x38   : > { %s2937_s4 = sshll.u32 %s257_s23, 3 }
  0x39   : > { %s3927_s17 = scalar_lea.vmem %s4767_s1, %s2937_s4 }
  0x3a   : > { %v272_v0 = vld [vmem:[%s3927_s17] sm:$0xff]  ;;  %v274_v1 = vld [vmem:[%s3927_s17 + $0x8] sm:$0xff]  ;;  %v276_v2 = vld [vmem:[%s3927_s17 + $0x10] sm:$0xff] }
  0x3b   : > { %273 = vst [vmem:[%s3932_s21] sm:$0xff] %v272_v0  ;;  %275 = vst [vmem:[%s3932_s21 + $0x8] sm:$0xff] %v274_v1  ;;  %v278_v3 = vld [vmem:[%s3927_s17 + $0x18] sm:$0xff]  ;;  %v280_v4 = vld [vmem:[%s3927_s17 + $0x40] sm:$0xff] }
  0x3c   : > { %277 = vst [vmem:[%s3932_s21 + $0x10] sm:$0xff] %v276_v2  ;;  %v282_v5 = vld [vmem:[%s3927_s17 + $0x48] sm:$0xff]  ;;  %279 = vst [vmem:[%s3932_s21 + $0x18] sm:$0xff] %v278_v3  ;;  %v284_v6 = vld [vmem:[%s3927_s17 + $0x50] sm:$0xff] }
  0x3d   : > { %281 = vst [vmem:[%s3932_s21 + $0x20] sm:$0xff] %v280_v4  ;;  %283 = vst [vmem:[%s3932_s21 + $0x28] sm:$0xff] %v282_v5  ;;  %v286_v7 = vld [vmem:[%s3927_s17 + $0x58] sm:$0xff]  ;;  %v288_v8 = vld [vmem:[%s3927_s17 + $0x80] sm:$0xff] }
  0x3e   : > { %285 = vst [vmem:[%s3932_s21 + $0x30] sm:$0xff] %v284_v6  ;;  %287 = vst [vmem:[%s3932_s21 + $0x38] sm:$0xff] %v286_v7  ;;  %v290_v9 = vld [vmem:[%s3927_s17 + $0x88] sm:$0xff]  ;;  %v292_v10 = vld [vmem:[%s3927_s17 + $0x90] sm:$0xff] }
  0x3f   : > { %289 = vst [vmem:[%s3932_s21 + $0x40] sm:$0xff] %v288_v8  ;;  %v294_v11 = vld [vmem:[%s3927_s17 + $0x98] sm:$0xff]  ;;  %291 = vst [vmem:[%s3932_s21 + $0x48] sm:$0xff] %v290_v9  ;;  %v296_v12 = vld [vmem:[%s3927_s17 + $0xc0] sm:$0xff] }
  0x40   : > { %293 = vst [vmem:[%s3932_s21 + $0x50] sm:$0xff] %v292_v10  ;;  %295 = vst [vmem:[%s3932_s21 + $0x58] sm:$0xff] %v294_v11  ;;  %v298_v13 = vld [vmem:[%s3927_s17 + $0xc8] sm:$0xff]  ;;  %v300_v14 = vld [vmem:[%s3927_s17 + $0xd0] sm:$0xff] }
  0x41   : > { %297 = vst [vmem:[%s3932_s21 + $0x60] sm:$0xff] %v296_v12  ;;  %299 = vst [vmem:[%s3932_s21 + $0x68] sm:$0xff] %v298_v13  ;;  %v302_v15 = vld [vmem:[%s3927_s17 + $0xd8] sm:$0xff]  ;;  %v304_v16 = vld [vmem:[%s3927_s17 + $0x100] sm:$0xff] }
  0x42   : > { %301 = vst [vmem:[%s3932_s21 + $0x70] sm:$0xff] %v300_v14  ;;  %v306_v17 = vld [vmem:[%s3927_s17 + $0x108] sm:$0xff]  ;;  %303 = vst [vmem:[%s3932_s21 + $0x78] sm:$0xff] %v302_v15  ;;  %v308_v18 = vld [vmem:[%s3927_s17 + $0x110] sm:$0xff] }
  0x43   : > { %305 = vst [vmem:[%s3932_s21 + $0x80] sm:$0xff] %v304_v16  ;;  %307 = vst [vmem:[%s3932_s21 + $0x88] sm:$0xff] %v306_v17  ;;  %v310_v19 = vld [vmem:[%s3927_s17 + $0x118] sm:$0xff]  ;;  %v312_v20 = vld [vmem:[%s3927_s17 + $0x140] sm:$0xff] }
  0x44   : > { %309 = vst [vmem:[%s3932_s21 + $0x90] sm:$0xff] %v308_v18  ;;  %311 = vst [vmem:[%s3932_s21 + $0x98] sm:$0xff] %v310_v19  ;;  %v314_v21 = vld [vmem:[%s3927_s17 + $0x148] sm:$0xff]  ;;  %v316_v22 = vld [vmem:[%s3927_s17 + $0x150] sm:$0xff] }
  0x45   : > { %313 = vst [vmem:[%s3932_s21 + $0xa0] sm:$0xff] %v312_v20  ;;  %v318_v23 = vld [vmem:[%s3927_s17 + $0x158] sm:$0xff]  ;;  %315 = vst [vmem:[%s3932_s21 + $0xa8] sm:$0xff] %v314_v21  ;;  %v320_v24 = vld [vmem:[%s3927_s17 + $0x180] sm:$0xff] }
  0x46   : > { %317 = vst [vmem:[%s3932_s21 + $0xb0] sm:$0xff] %v316_v22  ;;  %319 = vst [vmem:[%s3932_s21 + $0xb8] sm:$0xff] %v318_v23  ;;  %v322_v25 = vld [vmem:[%s3927_s17 + $0x188] sm:$0xff]  ;;  %v324_v26 = vld [vmem:[%s3927_s17 + $0x190] sm:$0xff] }
  0x47   : > { %321 = vst [vmem:[%s3932_s21 + $0xc0] sm:$0xff] %v320_v24  ;;  %323 = vst [vmem:[%s3932_s21 + $0xc8] sm:$0xff] %v322_v25  ;;  %v326_v27 = vld [vmem:[%s3927_s17 + $0x198] sm:$0xff]  ;;  %v328_v28 = vld [vmem:[%s3927_s17 + $0x1c0] sm:$0xff] }
  0x48   : > { %325 = vst [vmem:[%s3932_s21 + $0xd0] sm:$0xff] %v324_v26  ;;  %v330_v29 = vld [vmem:[%s3927_s17 + $0x1c8] sm:$0xff]  ;;  %327 = vst [vmem:[%s3932_s21 + $0xd8] sm:$0xff] %v326_v27  ;;  %v332_v30 = vld [vmem:[%s3927_s17 + $0x1d0] sm:$0xff] }
  0x49   : > { %329 = vst [vmem:[%s3932_s21 + $0xe0] sm:$0xff] %v328_v28  ;;  %331 = vst [vmem:[%s3932_s21 + $0xe8] sm:$0xff] %v330_v29  ;;  %v334_v31 = vld [vmem:[%s3927_s17 + $0x1d8] sm:$0xff] }
  0x4a   : > { %333 = vst [vmem:[%s3932_s21 + $0xf0] sm:$0xff] %v332_v30  ;;  %335 = vst [vmem:[%s3932_s21 + $0xf8] sm:$0xff] %v334_v31 }
  0x4b PF: > { %p2938_p5 = scmp.ge.s32.totalorder %s3773_s14, 1  ;;  %p376_p6 = scmp.lt.s32.totalorder %s3773_s14, 9 }
  0x4d   : > { %p377_p7 = pnand %p2938_p5, %p376_p6 }
  0x4e   : > { %s383_s18 = sand.u32 (!%p377_p7), 1, %s3749_s8   ;;  %s4752_s17 = sand.u32 (!%p377_p7), 1, %s3741_s30  }
  0x4f   : > { %380 = sbr.rel (%p377_p7) target bundleno = 1170 (0x492), region = 63  ;;  %s2939_s19 = sshll.u32 (!%p377_p7), %s383_s18, 8 }
  0x50   : > { %s2940_s20 = sshll.u32 (!%p377_p7), %s4752_s17, 7  ;;  %s436_s22 = sld [smem:[#allocation4 + %s3761_s11]] (!%p377_p7) }
  0x51   : > { %s447_s26 = sld [smem:[#allocation4 + %s3761_s11]] (!%p377_p7)  ;;  %s2946_s7 = sshll.u32 (!%p377_p7), %s3761_s11, 5 }
  0x52   : > { %p458_p8 = scmp.lt.s32.totalorder (!%p377_p7), %s2946_s7, 127  ;;  %s4023_s29 = scalar_lea.vmem (!%p377_p7), [#allocation6], %s2940_s20 }
  0x53   : > { %p2948_p11 = scmp.ne.s32.totalorder (!%p377_p7), %s3757_s10, 0 }
  0x56   : > { %s4789_s7 = smov (!%p458_p8, %s2946_s7), 127  ;;  %s437_s23 = sadd.s32 %s3757_s10, %s436_s22  ;;  %v3776_v32 = vmov (!%p2948_p11), 0.0  }
  0x57   : > { %s448_s4 = sadd.s32 %s3757_s10, %s447_s26  ;;  %s2941_s28 = sshll.u32 %s437_s23, 6  ;;  %469 = vst [vmem:[#allocation2] sm:$0xff] (!%p2948_p11), %v3776_v32  ;;  %470 = vst [vmem:[#allocation2 + $0x8] sm:$0xff] (!%p2948_p11), %v3776_v32 }
  0x58   : > { %s2944_s15 = sshll.u32 %s448_s4, 6  ;;  %p439_p9 = scmp.lt.s32.totalorder %s2941_s28, 127  ;;  %471 = vst [vmem:[#allocation2 + $0x10] sm:$0xff] (!%p2948_p11), %v3776_v32  ;;  %472 = vst [vmem:[#allocation2 + $0x18] sm:$0xff] (!%p2948_p11), %v3776_v32 }
  0x59   : > { %p450_p10 = scmp.lt.s32.totalorder %s2944_s15, 127  ;;  %s2947_s21 = sshll.u32 %s4789_s7, 3  ;;  %473 = vst [vmem:[#allocation2 + $0x20] sm:$0xff] (!%p2948_p11), %v3776_v32  ;;  %474 = vst [vmem:[#allocation2 + $0x28] sm:$0xff] (!%p2948_p11), %v3776_v32 }
  0x5a   : > { %s4791_s28 = smov (!%p439_p9, %s2941_s28), 127  ;;  %s4009_s18 = scalar_lea.vmem %s4746_s6, %s2947_s21  ;;  %475 = vst [vmem:[#allocation2 + $0x30] sm:$0xff] (!%p2948_p11), %v3776_v32  ;;  %476 = vst [vmem:[#allocation2 + $0x38] sm:$0xff] (!%p2948_p11), %v3776_v32 }
  0x5b   : > { %s4793_s15 = smov (!%p450_p10, %s2944_s15), 127  ;;  %s3094_s1 = sshll.u32 %s4791_s28, 3  ;;  %477 = vst [vmem:[#allocation2 + $0x40] sm:$0xff] (!%p2948_p11), %v3776_v32  ;;  %478 = vst [vmem:[#allocation2 + $0x48] sm:$0xff] (!%p2948_p11), %v3776_v32 }
  0x5c   : > { %s4014_s12 = scalar_lea.vmem %s4742_s2, %s3094_s1  ;;  %s2945_s22 = sshll.u32 %s4793_s15, 3  ;;  %479 = vst [vmem:[#allocation2 + $0x50] sm:$0xff] (!%p2948_p11), %v3776_v32  ;;  %480 = vst [vmem:[#allocation2 + $0x58] sm:$0xff] (!%p2948_p11), %v3776_v32 }
  0x5d   : > { %s4019_s4 = scalar_lea.vmem %s4745_s5, %s2945_s22  ;;  %s4021_s7 = scalar_lea.vmem [#allocation5], %s2939_s19  ;;  %481 = vst [vmem:[#allocation2 + $0x60] sm:$0xff] (!%p2948_p11), %v3776_v32  ;;  %482 = vst [vmem:[#allocation2 + $0x68] sm:$0xff] (!%p2948_p11), %v3776_v32 }
  0x5e   : > { %468 = sbr.rel (%p2948_p11) target bundleno = 103 (0x67), region = 71  ;;  %483 = vst [vmem:[#allocation2 + $0x70] sm:$0xff] (!%p2948_p11), %v3776_v32  ;;  %484 = vst [vmem:[#allocation2 + $0x78] sm:$0xff] (!%p2948_p11), %v3776_v32 }
  0x5f   : > { %485 = vst [vmem:[#allocation2 + $0x80] sm:$0xff] (!%p2948_p11), %v3776_v32  ;;  %486 = vst [vmem:[#allocation2 + $0x88] sm:$0xff] (!%p2948_p11), %v3776_v32 }
  0x60   : > { %487 = vst [vmem:[#allocation2 + $0x90] sm:$0xff] (!%p2948_p11), %v3776_v32  ;;  %488 = vst [vmem:[#allocation2 + $0x98] sm:$0xff] (!%p2948_p11), %v3776_v32 }
  0x61   : > { %489 = vst [vmem:[#allocation2 + $0xa0] sm:$0xff] (!%p2948_p11), %v3776_v32  ;;  %490 = vst [vmem:[#allocation2 + $0xa8] sm:$0xff] (!%p2948_p11), %v3776_v32 }
  0x62   : > { %491 = vst [vmem:[#allocation2 + $0xb0] sm:$0xff] (!%p2948_p11), %v3776_v32  ;;  %492 = vst [vmem:[#allocation2 + $0xb8] sm:$0xff] (!%p2948_p11), %v3776_v32 }
  0x63   : > { %493 = vst [vmem:[#allocation2 + $0xc0] sm:$0xff] (!%p2948_p11), %v3776_v32  ;;  %494 = vst [vmem:[#allocation2 + $0xc8] sm:$0xff] (!%p2948_p11), %v3776_v32 }
  0x64   : > { %495 = vst [vmem:[#allocation2 + $0xd0] sm:$0xff] (!%p2948_p11), %v3776_v32  ;;  %496 = vst [vmem:[#allocation2 + $0xd8] sm:$0xff] (!%p2948_p11), %v3776_v32 }
  0x65   : > { %497 = vst [vmem:[#allocation2 + $0xe0] sm:$0xff] %v3776_v32  ;;  %498 = vst [vmem:[#allocation2 + $0xe8] sm:$0xff] %v3776_v32 }
  0x66   : > { %499 = vst [vmem:[#allocation2 + $0xf0] sm:$0xff] %v3776_v32  ;;  %500 = vst [vmem:[#allocation2 + $0xf8] sm:$0xff] %v3776_v32 }
  0x67 PF: > { %v3542_v33 = vld [vmem:[%s4743_s3] sm:$0xff]   ;;  %v3777_v34 = vmov 0   ;;  %v3543_v35 = vld [vmem:[%s4743_s3 + $0x8] sm:$0xff]   ;;  %v3544_v36 = vld [vmem:[%s4743_s3 + $0x10] sm:$0xff]   ;;  %vm921_vm0 = vcmask 64512   ;;  %vm1018_vm1 = vcmask 1043456  }
  0x68   : > { %1022 = vmatprep.subr.bf16.mxu0 %v3777_v34  ;;  %3540 = vset.pattern.permute.xlu0 %v3777_v34  ;;  %v3553_v37 = vld [vmem:[%s4014_s12 + $0x4] ss:$8 sps:$4 sm:$0xff]   ;;  %v3545_v38 = vld [vmem:[%s4743_s3 + $0x18] sm:$0xff]   ;;  %v3548_v41 = vld [vmem:[%s4743_s3 + $0x30] sm:$0xff]   ;;  %p3054_p12 = scmp.ne.s32.totalorder %s3757_s10, 1 }
  0x69   : > { %1023 = vmatpush1.bf16.msra.mxu0 %v3542_v33  ;;  %3541 = vset.pattern.permute.xlu1 %v3777_v34  ;;  %v3546_v39 = vld [vmem:[%s4743_s3 + $0x20] sm:$0xff]   ;;  %v3547_v40 = vld [vmem:[%s4743_s3 + $0x28] sm:$0xff]   ;;  %v3549_v46 = vld [vmem:[%s4743_s3 + $0x38] sm:$0xff]  }
  0x6a   : > { %1024 = vmatprep.subr.bf16.mxu0 %v3777_v34  ;;  %3022 = vmatprep.mubr.msk.bf16.mxu0 %vm921_vm0, %v3553_v37  ;;  %v1327_v42 = vld [vmem:[%s4019_s4 + $0x80] sm:$0xff]  ;;  %v1328_v44 = vld [vmem:[%s4019_s4 + $0x88] sm:$0xff]  ;;  %v1329_v48 = vld [vmem:[%s4019_s4 + $0x90] sm:$0xff] }
  0x6b   : > { %v1311_v43 = vld [vmem:[%s4019_s4] sm:$0xff]  ;;  %1457 = vperm.xlu0 %3540, %v1327_v42   ;;  %v1312_v45 = vld [vmem:[%s4019_s4 + $0x8] sm:$0xff]  ;;  %v1330_v49 = vld [vmem:[%s4019_s4 + $0x98] sm:$0xff] }
  0x6c   : > { %1377 = vperm.xlu1 %3541, %v1311_v43   ;;  %v3550_v47 = vld [vmem:[%s4743_s3 + $0x40] ss:$0 sps:$4 sm:$0xff]   ;;  %v1313_v52 = vld [vmem:[%s4019_s4 + $0x10] sm:$0xff]  ;;  %v1314_v53 = vld [vmem:[%s4019_s4 + $0x18] sm:$0xff] }
  0x6d   : > { %1025 = vmatpush1.bf16.msra.mxu0 %v3543_v35  ;;  %v1020_v50 = vsel %vm1018_vm1, %v3550_v47, 0  ;;  %v3551_v51 = vld [vmem:[%s4014_s12] ss:$8 sps:$4 sm:$0xff]   ;;  %v3554_v54 = vld [vmem:[%s4014_s12 + $0x14] ss:$8 sps:$4 sm:$0xff]  }
  0x6e   : > { %1026 = vmatprep.subr.bf16.mxu0 %v3777_v34  ;;  %v1331_v55 = vld [vmem:[%s4019_s4 + $0xa0] sm:$0xff]  ;;  %v1332_v56 = vld [vmem:[%s4019_s4 + $0xa8] sm:$0xff]  ;;  %v3556_v57 = vld [vmem:[%s4014_s12 + $0x10] ss:$8 sps:$4 sm:$0xff]  }
  0x6f   : > { %1462 = vperm.xlu0 %3540, %v1328_v44   ;;  %v1315_v58 = vld [vmem:[%s4019_s4 + $0x20] sm:$0xff]  ;;  %v1316_v59 = vld [vmem:[%s4019_s4 + $0x28] sm:$0xff]  ;;  %v1333_v61 = vld [vmem:[%s4019_s4 + $0xb0] sm:$0xff] }
  0x70   : > { %1382 = vperm.xlu1 %3541, %v1312_v45   ;;  %v3557_v60 = vld [vmem:[%s4014_s12 + $0x24] ss:$8 sps:$4 sm:$0xff]   ;;  %v1334_v62 = vld [vmem:[%s4019_s4 + $0xb8] sm:$0xff]  ;;  %v3559_v63 = vld [vmem:[%s4014_s12 + $0x20] ss:$8 sps:$4 sm:$0xff]  }
  0x71   : > { %1027 = vmatpush1.bf16.msra.mxu0 %v3544_v36  ;;  %v1317_v0 = vld [vmem:[%s4019_s4 + $0x30] sm:$0xff]  ;;  %v1318_v1 = vld [vmem:[%s4019_s4 + $0x38] sm:$0xff]  ;;  %v1335_v3 = vld [vmem:[%s4019_s4 + $0xc0] sm:$0xff] }
  0x72   : > { %1028 = vmatprep.subr.bf16.mxu0 %v3777_v34  ;;  %v3560_v2 = vld [vmem:[%s4014_s12 + $0x34] ss:$8 sps:$4 sm:$0xff]   ;;  %v1336_v4 = vld [vmem:[%s4019_s4 + $0xc8] sm:$0xff]  ;;  %v3562_v5 = vld [vmem:[%s4014_s12 + $0x30] ss:$8 sps:$4 sm:$0xff]  }
  0x73   : > { %1467 = vperm.xlu0 %3540, %v1329_v48   ;;  %v1319_v6 = vld [vmem:[%s4019_s4 + $0x40] sm:$0xff]  ;;  %v1320_v7 = vld [vmem:[%s4019_s4 + $0x48] sm:$0xff]  ;;  %v1337_v9 = vld [vmem:[%s4019_s4 + $0xd0] sm:$0xff] }
  0x74   : > { %1472 = vperm.xlu1 %3541, %v1330_v49   ;;  %v3563_v8 = vld [vmem:[%s4014_s12 + $0x44] ss:$8 sps:$4 sm:$0xff]   ;;  %v1338_v10 = vld [vmem:[%s4019_s4 + $0xd8] sm:$0xff]  ;;  %v3565_v11 = vld [vmem:[%s4014_s12 + $0x40] ss:$8 sps:$4 sm:$0xff]  }
  0x75   : > { %1029 = vmatpush1.bf16.msra.mxu0 %v3545_v38  ;;  %v1321_v12 = vld [vmem:[%s4019_s4 + $0x50] sm:$0xff]  ;;  %v1322_v13 = vld [vmem:[%s4019_s4 + $0x58] sm:$0xff]  ;;  %v1339_v15 = vld [vmem:[%s4019_s4 + $0xe0] sm:$0xff] }
  0x76   : > { %1030 = vmatprep.subr.bf16.mxu0 %v3777_v34  ;;  %v3566_v14 = vld [vmem:[%s4014_s12 + $0x54] ss:$8 sps:$4 sm:$0xff]   ;;  %v1340_v16 = vld [vmem:[%s4019_s4 + $0xe8] sm:$0xff]  ;;  %v3568_v17 = vld [vmem:[%s4014_s12 + $0x50] ss:$8 sps:$4 sm:$0xff]  }
  0x77   : > { %1387 = vperm.xlu0 %3540, %v1313_v52   ;;  %v1323_v18 = vld [vmem:[%s4019_s4 + $0x60] sm:$0xff]  ;;  %v1324_v19 = vld [vmem:[%s4019_s4 + $0x68] sm:$0xff]  ;;  %v1341_v21 = vld [vmem:[%s4019_s4 + $0xf0] sm:$0xff] }
  0x78   : > { %1392 = vperm.xlu1 %3541, %v1314_v53   ;;  %v3569_v20 = vld [vmem:[%s4014_s12 + $0x64] ss:$8 sps:$4 sm:$0xff]   ;;  %v1342_v22 = vld [vmem:[%s4019_s4 + $0xf8] sm:$0xff]  ;;  %v3571_v23 = vld [vmem:[%s4014_s12 + $0x60] ss:$8 sps:$4 sm:$0xff]  }
  0x79   : > { %1031 = vmatpush1.bf16.msra.mxu0 %v3546_v39  ;;  %v1325_v24 = vld [vmem:[%s4019_s4 + $0x70] sm:$0xff]  ;;  %v1326_v25 = vld [vmem:[%s4019_s4 + $0x78] sm:$0xff]  ;;  %v1360_v27 = vld [vmem:[%s4019_s4 + $0x188] sm:$0xff] }
  0x7a   : > { %1032 = vmatprep.subr.bf16.mxu0 %v3777_v34  ;;  %v3572_v26 = vld [vmem:[%s4014_s12 + $0x74] ss:$8 sps:$4 sm:$0xff]   ;;  %v1359_v28 = vld [vmem:[%s4019_s4 + $0x180] sm:$0xff]  ;;  %v3574_v29 = vld [vmem:[%s4014_s12 + $0x70] ss:$8 sps:$4 sm:$0xff]  }
  0x7b   : > { %1477 = vperm.xlu0 %3540, %v1331_v55   ;;  %v1344_v30 = vld [vmem:[%s4019_s4 + $0x108] sm:$0xff]  ;;  %v1343_v31 = vld [vmem:[%s4019_s4 + $0x100] sm:$0xff]  ;;  %v1362_v33 = vld [vmem:[%s4019_s4 + $0x198] sm:$0xff] }
  0x7c   : > { %1482 = vperm.xlu1 %3541, %v1332_v56   ;;  %v3575_v32 = vld [vmem:[%s4014_s12 + $0x84] ss:$8 sps:$4 sm:$0xff]   ;;  %v3577_v35 = vld [vmem:[%s4014_s12 + $0x80] ss:$8 sps:$4 sm:$0xff]   ;;  %v1346_v36 = vld [vmem:[%s4019_s4 + $0x118] sm:$0xff] }
  0x7d   : > { %1033 = vmatpush1.bf16.msra.mxu0 %v3547_v40  ;;  %v1345_v37 = vld [vmem:[%s4019_s4 + $0x110] sm:$0xff]  ;;  %v1364_v39 = vld [vmem:[%s4019_s4 + $0x1a8] sm:$0xff]  ;;  %v1363_v40 = vld [vmem:[%s4019_s4 + $0x1a0] sm:$0xff] }
  0x7e   : > { %1034 = vmatprep.subr.bf16.mxu0 %v3777_v34  ;;  %v3578_v38 = vld [vmem:[%s4014_s12 + $0x94] ss:$8 sps:$4 sm:$0xff]   ;;  %v1348_v42 = vld [vmem:[%s4019_s4 + $0x128] sm:$0xff]  ;;  %v1347_v43 = vld [vmem:[%s4019_s4 + $0x120] sm:$0xff] }
  0x7f   : > { %1397 = vperm.xlu0 %3540, %v1315_v58   ;;  %v3581_v44 = vld [vmem:[%s4014_s12 + $0xa4] ss:$8 sps:$4 sm:$0xff]   ;;  %v1366_v45 = vld [vmem:[%s4019_s4 + $0x1b8] sm:$0xff]  ;;  %v3583_v47 = vld [vmem:[%s4014_s12 + $0xa0] ss:$8 sps:$4 sm:$0xff]  }
  0x80   : > { %1402 = vperm.xlu1 %3541, %v1316_v59   ;;  %v1350_v48 = vld [vmem:[%s4019_s4 + $0x138] sm:$0xff]  ;;  %v1349_v49 = vld [vmem:[%s4019_s4 + $0x130] sm:$0xff]  ;;  %v1367_v52 = vld [vmem:[%s4019_s4 + $0x1c0] sm:$0xff] }
  0x81   : > { %1035 = vmatpush1.bf16.msra.mxu0 %v3548_v41  ;;  %v3580_v41 = vld [vmem:[%s4014_s12 + $0x90] ss:$8 sps:$4 sm:$0xff]   ;;  %v1351_v55 = vld [vmem:[%s4019_s4 + $0x140] sm:$0xff] }
  0x82   : > { %1036 = vmatprep.subr.bf16.mxu0 %v3777_v34  ;;  %v3586_v53 = vld [vmem:[%s4014_s12 + $0xb0] ss:$8 sps:$4 sm:$0xff]   ;;  %v3587_v56 = vld [vmem:[%s4014_s12 + $0xc4] ss:$8 sps:$4 sm:$0xff]   ;;  %v3589_v59 = vld [vmem:[%s4014_s12 + $0xc0] ss:$8 sps:$4 sm:$0xff]  }
  0x83   : > { %1487 = vperm.xlu0 %3540, %v1333_v61   ;;  %v1369_v58 = vld [vmem:[%s4019_s4 + $0x1d0] sm:$0xff] }
  0x84   : > { %1492 = vperm.xlu1 %3541, %v1334_v62   ;;  %v1353_v61 = vld [vmem:[%s4019_s4 + $0x150] sm:$0xff] }
  0x85   : > { %1037 = vmatpush1.bf16.msra.mxu0 %v3549_v46  ;;  %v1365_v46 = vld [vmem:[%s4019_s4 + $0x1b0] sm:$0xff] }
  0x86   : > { %1038 = vmatprep.subr.bf16.mxu0 %v3777_v34  ;;  %v1361_v34 = vld [vmem:[%s4019_s4 + $0x190] sm:$0xff] }
  0x87   : > { %1407 = vperm.xlu0 %3540, %v1317_v0   ;;  %v3590_v62 = vld [vmem:[%s4014_s12 + $0xd4] ss:$8 sps:$4 sm:$0xff]   ;;  %v1371_v0 = vld [vmem:[%s4019_s4 + $0x1e0] sm:$0xff] }
  0x88   : > { %1412 = vperm.xlu1 %3541, %v1318_v1   ;;  %v3592_v1 = vld [vmem:[%s4014_s12 + $0xd0] ss:$8 sps:$4 sm:$0xff]  }
  0x89   : > { %1039 = vmatpush1.bf16.msra.mxu0 %v1020_v50  ;;  %v3584_v50 = vld [vmem:[%s4014_s12 + $0xb4] ss:$8 sps:$4 sm:$0xff]  }
  0x8b   : > { %1497 = vperm.xlu0 %3540, %v1335_v3   ;;  %v1355_v3 = vld [vmem:[%s4019_s4 + $0x160] sm:$0xff] }
  0x8c   : > { %1055 = vmatmul.mubr.bf16.vlgmr.msra.gmra.mrb[0].mxu0 %v3551_v51  ;;  %1502 = vperm.xlu1 %3541, %v1336_v4   ;;  %v1368_v51 = vld [vmem:[%s4019_s4 + $0x1c8] sm:$0xff] }
  0x8d   : > { %3023 = vmatprep.mubr.msk.bf16.mxu0 %vm921_vm0, %v3554_v54  ;;  %v1352_v54 = vld [vmem:[%s4019_s4 + $0x148] sm:$0xff] }
  0x8e   : > { %v3593_v4 = vld [vmem:[%s4014_s12 + $0xe4] ss:$8 sps:$4 sm:$0xff]  }
  0x8f   : > { %1417 = vperm.xlu0 %3540, %v1319_v6   ;;  %v1373_v6 = vld [vmem:[%s4019_s4 + $0x1f0] sm:$0xff] }
  0x90   : > { %1422 = vperm.xlu1 %3541, %v1320_v7   ;;  %v3595_v7 = vld [vmem:[%s4014_s12 + $0xe0] ss:$8 sps:$4 sm:$0xff]  }
  0x93   : > { %1507 = vperm.xlu0 %3540, %v1337_v9   ;;  %v1357_v9 = vld [vmem:[%s4019_s4 + $0x170] sm:$0xff] }
  0x94   : > { %1063 = vmatmul.mubr.bf16.gmra.mrb[4].mxu0 %v3556_v57  ;;  %1512 = vperm.xlu1 %3541, %v1338_v10   ;;  %v1370_v57 = vld [vmem:[%s4019_s4 + $0x1d8] sm:$0xff] }
  0x95   : > { %3024 = vmatprep.mubr.msk.bf16.mxu0 %vm921_vm0, %v3557_v60  ;;  %v1354_v60 = vld [vmem:[%s4019_s4 + $0x158] sm:$0xff] }
  0x96   : > { %v3596_v10 = vld [vmem:[%s4014_s12 + $0xf4] ss:$8 sps:$4 sm:$0xff]  }
  0x97   : > { %1427 = vperm.xlu0 %3540, %v1321_v12   ;;  %v3599_v12 = vld [vmem:[%s4014_s12 + $0x104] ss:$8 sps:$4 sm:$0xff]  }
  0x98   : > { %1432 = vperm.xlu1 %3541, %v1322_v13   ;;  %v3601_v13 = vld [vmem:[%s4014_s12 + $0x100] ss:$8 sps:$4 sm:$0xff]  }
  0x9b   : > { %1517 = vperm.xlu0 %3540, %v1339_v15   ;;  %v3604_v15 = vld [vmem:[%s4014_s12 + $0x110] ss:$8 sps:$4 sm:$0xff]  }
  0x9c   : > { %1071 = vmatmul.mubr.bf16.gmra.mrb[8].mxu0 %v3559_v63  ;;  %1522 = vperm.xlu1 %3541, %v1340_v16   ;;  %v1372_v63 = vld [vmem:[%s4019_s4 + $0x1e8] sm:$0xff] }
  0x9d   : > { %3025 = vmatprep.mubr.msk.bf16.mxu0 %vm921_vm0, %v3560_v2  ;;  %v1356_v2 = vld [vmem:[%s4019_s4 + $0x168] sm:$0xff] }
  0x9e   : > { %v3605_v16 = vld [vmem:[%s4014_s12 + $0x124] ss:$8 sps:$4 sm:$0xff]  }
  0x9f   : > { %1437 = vperm.xlu0 %3540, %v1323_v18   ;;  %v3608_v18 = vld [vmem:[%s4014_s12 + $0x134] ss:$8 sps:$4 sm:$0xff]  }
  0xa0   : > { %1442 = vperm.xlu1 %3541, %v1324_v19   ;;  %v3610_v19 = vld [vmem:[%s4014_s12 + $0x130] ss:$8 sps:$4 sm:$0xff]  }
  0xa3   : > { %1527 = vperm.xlu0 %3540, %v1341_v21   ;;  %v3613_v21 = vld [vmem:[%s4014_s12 + $0x140] ss:$8 sps:$4 sm:$0xff]  }
  0xa4   : > { %1079 = vmatmul.mubr.bf16.gmra.mrb[12].mxu0 %v3562_v5  ;;  %1532 = vperm.xlu1 %3541, %v1342_v22   ;;  %v1374_v5 = vld [vmem:[%s4019_s4 + $0x1f8] sm:$0xff] }
  0xa5   : > { %3026 = vmatprep.mubr.msk.bf16.mxu0 %vm921_vm0, %v3563_v8  ;;  %v1358_v8 = vld [vmem:[%s4019_s4 + $0x178] sm:$0xff]  ;;  %s4768_s4 = sld [smem:[#allocation17_spill]] (!%p3054_p12) }
  0xa6   : > { %v3614_v22 = vld [vmem:[%s4014_s12 + $0x154] ss:$8 sps:$4 sm:$0xff]  }
  0xa7   : > { %1447 = vperm.xlu0 %3540, %v1325_v24   ;;  %v3617_v24 = vld [vmem:[%s4014_s12 + $0x164] ss:$8 sps:$4 sm:$0xff]  }
  0xa8   : > { %1452 = vperm.xlu1 %3541, %v1326_v25   ;;  %v3619_v25 = vld [vmem:[%s4014_s12 + $0x160] ss:$8 sps:$4 sm:$0xff]  }
  0xab   : > { %1617 = vperm.xlu0 %3540, %v1359_v28  }
  0xac   : > { %1087 = vmatmul.mubr.bf16.gmra.mrb[16].mxu0 %v3565_v11  ;;  %1622 = vperm.xlu1 %3541, %v1360_v27   ;;  %v3598_v11 = vld [vmem:[%s4014_s12 + $0xf0] ss:$8 sps:$4 sm:$0xff]  }
  0xad   : > { %3027 = vmatprep.mubr.msk.bf16.mxu0 %vm921_vm0, %v3566_v14  ;;  %v3602_v14 = vld [vmem:[%s4014_s12 + $0x114] ss:$8 sps:$4 sm:$0xff]  }
  0xaf   : > { %1537 = vperm.xlu0 %3540, %v1343_v31  }
  0xb0   : > { %1542 = vperm.xlu1 %3541, %v1344_v30   ;;  %v3623_v30 = vld [vmem:[%s4014_s12 + $0x184] ss:$8 sps:$4 sm:$0xff]  }
  0xb3   : > { %1627 = vperm.xlu0 %3540, %v1361_v34   ;;  %v3626_v34 = vld [vmem:[%s4014_s12 + $0x194] ss:$8 sps:$4 sm:$0xff]  }
  0xb4   : > { %1095 = vmatmul.mubr.bf16.gmra.mrb[20].mxu0 %v3568_v17  ;;  %1632 = vperm.xlu1 %3541, %v1362_v33   ;;  %v3607_v17 = vld [vmem:[%s4014_s12 + $0x120] ss:$8 sps:$4 sm:$0xff]  }
  0xb5   : > { %3028 = vmatprep.mubr.msk.bf16.mxu0 %vm921_vm0, %v3569_v20  ;;  %v3611_v20 = vld [vmem:[%s4014_s12 + $0x144] ss:$8 sps:$4 sm:$0xff]   ;;  %v3625_v33 = vld [vmem:[%s4014_s12 + $0x180] ss:$8 sps:$4 sm:$0xff]  }
  0xb7   : > { %1547 = vperm.xlu0 %3540, %v1345_v37   ;;  %v3628_v37 = vld [vmem:[%s4014_s12 + $0x190] ss:$8 sps:$4 sm:$0xff]  }
  0xb8   : > { %1552 = vperm.xlu1 %3541, %v1346_v36  }
  0xbb   : > { %1637 = vperm.xlu0 %3540, %v1363_v40  }
  0xbc   : > { %1103 = vmatmul.mubr.bf16.gmra.mrb[24].mxu0 %v3571_v23  ;;  %1642 = vperm.xlu1 %3541, %v1364_v39   ;;  %v3616_v23 = vld [vmem:[%s4014_s12 + $0x150] ss:$8 sps:$4 sm:$0xff]   ;;  %v3629_v39 = vld [vmem:[%s4014_s12 + $0x1a4] ss:$8 sps:$4 sm:$0xff]  }
  0xbd   : > { %3029 = vmatprep.mubr.msk.bf16.mxu0 %vm921_vm0, %v3572_v26  ;;  %v3620_v26 = vld [vmem:[%s4014_s12 + $0x174] ss:$8 sps:$4 sm:$0xff]  }
  0xbf   : > { %1557 = vperm.xlu0 %3540, %v1347_v43   ;;  %v3631_v43 = vld [vmem:[%s4014_s12 + $0x1a0] ss:$8 sps:$4 sm:$0xff]  }
  0xc0   : > { %1562 = vperm.xlu1 %3541, %v1348_v42  }
  0xc3   : > { %1647 = vperm.xlu0 %3540, %v1365_v46  }
  0xc4   : > { %1111 = vmatmul.mubr.bf16.gmra.mrb[28].mxu0 %v3574_v29  ;;  %1652 = vperm.xlu1 %3541, %v1366_v45   ;;  %v3622_v29 = vld [vmem:[%s4014_s12 + $0x170] ss:$8 sps:$4 sm:$0xff]  }
  0xc5   : > { %3030 = vmatprep.mubr.msk.bf16.mxu0 %vm921_vm0, %v3575_v32 }
  0xc7   : > { %1567 = vperm.xlu0 %3540, %v1349_v49  }
  0xc8   : > { %1572 = vperm.xlu1 %3541, %v1350_v48  }
  0xcb   : > { %1657 = vperm.xlu0 %3540, %v1367_v52  }
  0xcc   : > { %1119 = vmatmul.mubr.bf16.gmra.mrb[32].mxu0 %v3577_v35  ;;  %1662 = vperm.xlu1 %3541, %v1368_v51   ;;  %v3634_v51 = vld [vmem:[%s4014_s12 + $0x1b0] ss:$8 sps:$4 sm:$0xff]  }
  0xcd   : > { %3031 = vmatprep.mubr.msk.bf16.mxu0 %vm921_vm0, %v3578_v38 }
  0xcf   : > { %1577 = vperm.xlu0 %3540, %v1351_v55  }
  0xd0   : > { %1582 = vperm.xlu1 %3541, %v1352_v54  }
  0xd3   : > { %1667 = vperm.xlu0 %3540, %v1369_v58  }
  0xd4   : > { %1127 = vmatmul.mubr.bf16.gmra.mrb[36].mxu0 %v3580_v41  ;;  %1672 = vperm.xlu1 %3541, %v1370_v57  }
  0xd5   : > { %3032 = vmatprep.mubr.msk.bf16.mxu0 %vm921_vm0, %v3581_v44  ;;  %v3632_v44 = vld [vmem:[%s4014_s12 + $0x1b4] ss:$8 sps:$4 sm:$0xff]  }
  0xd7   : > { %1587 = vperm.xlu0 %3540, %v1353_v61  }
  0xd8   : > { %1592 = vperm.xlu1 %3541, %v1354_v60  }
  0xdb   : > { %1677 = vperm.xlu0 %3540, %v1371_v0  }
  0xdc   : > { %1135 = vmatmul.mubr.bf16.gmra.mrb[40].mxu0 %v3583_v47  ;;  %1682 = vperm.xlu1 %3541, %v1372_v63   ;;  %v4213_v47 = vld [vmem:[%s4021_s7 + $0x8] sm:$0xff] }
  0xdd   : > { %3033 = vmatprep.mubr.msk.bf16.mxu0 %vm921_vm0, %v3584_v50  ;;  %v1824_v49 = vunpack.c.l.s8.bf16 %v4213_v47 }
  0xdf   : > { %1597 = vperm.xlu0 %3540, %v1355_v3   ;;  %1951 = vmatprep.mubr.bf16.mxu1 %v1824_v49 }
  0xe0   : > { %1602 = vperm.xlu1 %3541, %v1356_v2  }
  0xe3   : > { %1687 = vperm.xlu0 %3540, %v1373_v6  }
  0xe4   : > { %1143 = vmatmul.mubr.bf16.gmra.mrb[44].mxu0 %v3586_v53  ;;  %1692 = vperm.xlu1 %3541, %v1374_v5   ;;  %v3635_v53 = vld [vmem:[%s4014_s12 + $0x1c4] ss:$8 sps:$4 sm:$0xff]  }
  0xe5   : > { %3034 = vmatprep.mubr.msk.bf16.mxu0 %vm921_vm0, %v3587_v56 }
  0xe7   : > { %1607 = vperm.xlu0 %3540, %v1357_v9  }
  0xe8   : > { %1612 = vperm.xlu1 %3541, %v1358_v8  }
  0xea   : > { %v4188_v27 = vpop.permute.xlu0 %1457 }
  0xeb   : > { %v1378_v28 = vpop.permute.xlu1 %1377 }
  0xec   : > { %1151 = vmatmul.mubr.bf16.gmra.mrb[48].mxu0 %v3589_v59 }
  0xed   : > { %3035 = vmatprep.mubr.msk.bf16.mxu0 %vm921_vm0, %v3590_v62  ;;  %v3637_v62 = vld [vmem:[%s4014_s12 + $0x1c0] ss:$8 sps:$4 sm:$0xff]  }
  0xee   : > { %v4192_v31 = vpop.permute.xlu0 %1462 }
  0xef   : > { %v1383_v32 = vpop.permute.xlu1 %1382 }
  0xf2   : > { %v4197_v35 = vpop.permute.xlu0 %1467 }
  0xf3   : > { %v4199_v36 = vpop.permute.xlu1 %1472 }
  0xf4   : > { %1159 = vmatmul.mubr.bf16.gmra.mrb[52].mxu0 %v3592_v1  ;;  %v3638_v1 = vld [vmem:[%s4014_s12 + $0x1d4] ss:$8 sps:$4 sm:$0xff]  }
  0xf5   : > { %3036 = vmatprep.mubr.msk.bf16.mxu0 %vm921_vm0, %v3593_v4 }
  0xf6   : > { %v1388_v38 = vpop.permute.xlu0 %1387 }
  0xf7   : > { %v1393_v40 = vpop.permute.xlu1 %1392 }
  0xfa   : > { %v4205_v41 = vpop.permute.xlu0 %1477 }
  0xfb   : > { %v4207_v42 = vpop.permute.xlu1 %1482 }
  0xfc   : > { %1167 = vmatmul.mubr.bf16.gmra.mrb[56].mxu0 %v3595_v7 }
  0xfd   : > { %3037 = vmatprep.mubr.msk.bf16.mxu0 %vm921_vm0, %v3596_v10 }
  0xfe   : > { %v1398_v45 = vpop.permute.xlu0 %1397 }
  0xff   : > { %v1403_v46 = vpop.permute.xlu1 %1402 }
 0x102   : > { %v4222_v57 = vpop.permute.xlu0 %1487 }
 0x103   : > { %v4224_v58 = vpop.permute.xlu1 %1492 }
 0x104   : > { %1175 = vmatmul.mubr.bf16.gmra.mrb[60].mxu0 %v3598_v11  ;;  %v3640_v11 = vld [vmem:[%s4014_s12 + $0x1d0] ss:$8 sps:$4 sm:$0xff]  }
 0x105   : > { %3038 = vmatprep.mubr.msk.bf16.mxu0 %vm921_vm0, %v3599_v12 }
 0x106   : > { %v1408_v63 = vpop.permute.xlu0 %1407 }
 0x107   : > { %v1413_v2 = vpop.permute.xlu1 %1412 }
 0x10a   : > { %v4238_v7 = vpop.permute.xlu0 %1497 }
 0x10b   : > { %v4240_v9 = vpop.permute.xlu1 %1502 }
 0x10c   : > { %1183 = vmatmul.mubr.bf16.gmra.mrb[64].mxu0 %v3601_v13  ;;  %v3641_v13 = vld [vmem:[%s4014_s12 + $0x1e4] ss:$8 sps:$4 sm:$0xff]  }
 0x10d   : > { %3039 = vmatprep.mubr.msk.bf16.mxu0 %vm921_vm0, %v3602_v14 }
 0x114   : > { %1191 = vmatmul.mubr.bf16.gmra.mrb[68].mxu0 %v3604_v15 }
 0x115   : > { %3040 = vmatprep.mubr.msk.bf16.mxu0 %vm921_vm0, %v3605_v16 }
 0x11c   : > { %1199 = vmatmul.mubr.bf16.gmra.mrb[72].mxu0 %v3607_v17 }
 0x11d   : > { %3041 = vmatprep.mubr.msk.bf16.mxu0 %vm921_vm0, %v3608_v18  ;;  %v1418_v18 = vpop.permute.xlu0 %1417 }
 0x124   : > { %1207 = vmatmul.mubr.bf16.gmra.mrb[76].mxu0 %v3610_v19  ;;  %v1423_v19 = vpop.permute.xlu1 %1422 }
 0x125   : > { %3042 = vmatprep.mubr.msk.bf16.mxu0 %vm921_vm0, %v3611_v20 }
 0x12c   : > { %1215 = vmatmul.mubr.bf16.gmra.mrb[80].mxu0 %v3613_v21 }
 0x12d   : > { %3043 = vmatprep.mubr.msk.bf16.mxu0 %vm921_vm0, %v3614_v22  ;;  %v3643_v22 = vld [vmem:[%s4014_s12 + $0x1e0] ss:$8 sps:$4 sm:$0xff]  }
 0x134   : > { %1223 = vmatmul.mubr.bf16.gmra.mrb[84].mxu0 %v3616_v23 }
 0x135   : > { %3044 = vmatprep.mubr.msk.bf16.mxu0 %vm921_vm0, %v3617_v24  ;;  %v3644_v24 = vld [vmem:[%s4014_s12 + $0x1f4] ss:$8 sps:$4 sm:$0xff]  }
 0x13c   : > { %1231 = vmatmul.mubr.bf16.gmra.mrb[88].mxu0 %v3619_v25 }
 0x13d   : > { %3045 = vmatprep.mubr.msk.bf16.mxu0 %vm921_vm0, %v3620_v26 }
 0x144   : > { %1239 = vmatmul.mubr.bf16.gmra.mrb[92].mxu0 %v3622_v29  ;;  %v4257_v29 = vpop.permute.xlu0 %1507 }
 0x145   : > { %3046 = vmatprep.mubr.msk.bf16.mxu0 %vm921_vm0, %v3623_v30  ;;  %v4259_v30 = vpop.permute.xlu1 %1512 }
 0x14c   : > { %1247 = vmatmul.mubr.bf16.gmra.mrb[96].mxu0 %v3625_v33 }
 0x14d   : > { %3047 = vmatprep.mubr.msk.bf16.mxu0 %vm921_vm0, %v3626_v34 }
 0x154   : > { %1255 = vmatmul.mubr.bf16.gmra.mrb[100].mxu0 %v3628_v37  ;;  %v3646_v37 = vld [vmem:[%s4014_s12 + $0x1f0] ss:$8 sps:$4 sm:$0xff]  }
 0x155   : > { %3048 = vmatprep.mubr.msk.bf16.mxu0 %vm921_vm0, %v3629_v39 }
 0x15c   : > { %1263 = vmatmul.mubr.bf16.gmra.mrb[104].mxu0 %v3631_v43 }
 0x15d   : > { %3049 = vmatprep.mubr.msk.bf16.mxu0 %vm921_vm0, %v3632_v44 }
 0x15f   : > { %v1056_v48 = vpop.f32.mrb[0].mxu0 }
 0x160   : > { %v1058_v50 = vpop.f32.mrb[1].mxu0  ;;  %v4218_v54 = vmul.f32 %v1378_v28, %v1056_v48 }
 0x161   : > { %v1059_v52 = vpop.f32.mrb[2].mxu0 }
 0x162   : > { %v4220_v55 = vmul.f32 %v1383_v32, %v1059_v52  ;;  %v1061_v56 = vpop.f32.mrb[3].mxu0 }
 0x164   : > { %1271 = vmatmul.mubr.bf16.gmra.mrb[108].mxu0 %v3634_v51  ;;  %v1759_v59 = vpack.c.bf16 %v4220_v55, %v4218_v54 }
 0x165   : > { %3050 = vmatprep.mubr.msk.bf16.mxu0 %vm921_vm0, %v3635_v53 }
 0x167   : > { %v1064_v60 = vpop.f32.mrb[4].mxu0 }
 0x168   : > { %v1066_v61 = vpop.f32.mrb[5].mxu0  ;;  %v4231_v3 = vmul.f32 %v1388_v38, %v1064_v60  ;;  %v1428_v38 = vpop.permute.xlu0 %1427 }
 0x169   : > { %v1067_v0 = vpop.f32.mrb[6].mxu0 }
 0x16a   : > { %v4233_v4 = vmul.f32 %v1393_v40, %v1067_v0  ;;  %v1069_v5 = vpop.f32.mrb[7].mxu0  ;;  %v1433_v40 = vpop.permute.xlu1 %1432 }
 0x16c   : > { %v1760_v6 = vpack.c.bf16 %v4233_v4, %v4231_v3  ;;  %1279 = vmatmul.mubr.bf16.gmra.mrb[112].mxu0 %v3637_v62  ;;  %v4271_v48 = vpop.permute.xlu0 %1517 }
 0x16d   : > { %3051 = vmatprep.mubr.msk.bf16.mxu0 %vm921_vm0, %v3638_v1 }
 0x16e   : > { %v4273_v50 = vpop.permute.xlu1 %1522 }
 0x16f   : > { %v1072_v8 = vpop.f32.mrb[8].mxu0 }
 0x170   : > { %v1074_v10 = vpop.f32.mrb[9].mxu0  ;;  %v4244_v14 = vmul.f32 %v1398_v45, %v1072_v8  ;;  %v1438_v62 = vpop.permute.xlu0 %1437 }
 0x171   : > { %v1075_v12 = vpop.f32.mrb[10].mxu0 }
 0x172   : > { %v4246_v15 = vmul.f32 %v1403_v46, %v1075_v12  ;;  %v1077_v16 = vpop.f32.mrb[11].mxu0 }
 0x174   : > { %v1761_v17 = vpack.c.bf16 %v4246_v15, %v4244_v14  ;;  %1287 = vmatmul.mubr.bf16.gmra.mrb[116].mxu0 %v3640_v11  ;;  %v4285_v11 = vpop.permute.xlu0 %1527 }
 0x175   : > { %3052 = vmatprep.mubr.msk.bf16.mxu0 %vm921_vm0, %v3641_v13 }
 0x177   : > { %v1080_v20 = vpop.f32.mrb[12].mxu0 }
 0x178   : > { %v1082_v21 = vpop.f32.mrb[13].mxu0  ;;  %v4253_v25 = vmul.f32 %v1408_v63, %v1080_v20  ;;  %v1443_v63 = vpop.permute.xlu1 %1442 }
 0x179   : > { %v1083_v23 = vpop.f32.mrb[14].mxu0 }
 0x17a   : > { %v4255_v26 = vmul.f32 %v1413_v2, %v1083_v23  ;;  %v1085_v28 = vpop.f32.mrb[15].mxu0 }
 0x17c   : > { %v1762_v32 = vpack.c.bf16 %v4255_v26, %v4253_v25  ;;  %1295 = vmatmul.mubr.bf16.gmra.mrb[120].mxu0 %v3643_v22  ;;  %v4287_v12 = vpop.permute.xlu1 %1532 }
 0x17d   : > { %3053 = vmatprep.mubr.msk.bf16.mxu0 %vm921_vm0, %v3644_v24 }
 0x17f   : > { %v1088_v33 = vpop.f32.mrb[16].mxu0 }
 0x180   : > { %v1090_v34 = vpop.f32.mrb[17].mxu0  ;;  %v4265_v43 = vmul.f32 %v1418_v18, %v1088_v33  ;;  %v1448_v18 = vpop.permute.xlu0 %1447 }
 0x181   : > { %v1091_v39 = vpop.f32.mrb[18].mxu0  ;;  %v1453_v20 = vpop.permute.xlu1 %1452 }
 0x182   : > { %v4267_v44 = vmul.f32 %v1423_v19, %v1091_v39  ;;  %v1093_v45 = vpop.f32.mrb[19].mxu0 }
 0x184   : > { %v1763_v46 = vpack.c.bf16 %v4267_v44, %v4265_v43  ;;  %1303 = vmatmul.mubr.bf16.gmra.mrb[124].mxu0 %v3646_v37 }
 0x187   : > { %v1096_v49 = vpop.f32.mrb[20].mxu0 }
 0x188   : > { %v1098_v51 = vpop.f32.mrb[21].mxu0  ;;  %v4275_v53 = vmul.f32 %v1428_v38, %v1096_v49 }
 0x189   : > { %v1099_v52 = vpop.f32.mrb[22].mxu0 }
 0x18a   : > { %v4277_v56 = vmul.f32 %v1433_v40, %v1099_v52  ;;  %v1101_v60 = vpop.f32.mrb[23].mxu0 }
 0x18c   : > { %v1764_v61 = vpack.c.bf16 %v4277_v56, %v4275_v53 }
 0x18f   : > { %v1104_v0 = vpop.f32.mrb[24].mxu0 }
 0x190   : > { %v1106_v1 = vpop.f32.mrb[25].mxu0  ;;  %v4281_v5 = vmul.f32 %v1438_v62, %v1104_v0 }
 0x191   : > { %v1107_v2 = vpop.f32.mrb[26].mxu0 }
 0x192   : > { %v4283_v8 = vmul.f32 %v1443_v63, %v1107_v2  ;;  %v1109_v10 = vpop.f32.mrb[27].mxu0 }
 0x194   : > { %v1765_v13 = vpack.c.bf16 %v4283_v8, %v4281_v5  ;;  %v1828_v5 = vunpack.c.h.s8.bf16 %v4213_v47 }
 0x197   : > { %v1112_v16 = vpop.f32.mrb[28].mxu0 }
 0x198   : > { %v1114_v19 = vpop.f32.mrb[29].mxu0  ;;  %v4291_v22 = vmul.f32 %v1448_v18, %v1112_v16  ;;  %v4314_v18 = vpop.permute.xlu1 %1622 }
 0x199   : > { %v1115_v21 = vpop.f32.mrb[30].mxu0 }
 0x19a   : > { %v4293_v23 = vmul.f32 %v1453_v20, %v1115_v21  ;;  %v1117_v24 = vpop.f32.mrb[31].mxu0 }
 0x19c   : > { %v1766_v28 = vpack.c.bf16 %v4293_v23, %v4291_v22  ;;  %v1796_v23 = vld [vmem:[%s4021_s7 + $0x28] sm:$0xff] }
 0x19f   : > { %v1120_v33 = vpop.f32.mrb[32].mxu0 }
 0x1a0   : > { %v1122_v34 = vpop.f32.mrb[33].mxu0  ;;  %v1711_v38 = vmul.f32 %v4188_v27, %v1120_v33 }
 0x1a1   : > { %v1123_v37 = vpop.f32.mrb[34].mxu0 }
 0x1a2   : > { %v1712_v39 = vmul.f32 %v4192_v31, %v1123_v37  ;;  %v1125_v40 = vpop.f32.mrb[35].mxu0 }
 0x1a4   : > { %v1767_v45 = vpack.c.bf16 %v1712_v39, %v1711_v38 }
 0x1a6   : > { %3223 = vmatprep.subr.bf16.mxu1 %v1767_v45 }
 0x1a7   : > { %v1128_v49 = vpop.f32.mrb[36].mxu0  ;;  %3224 = vmatpush3.bf16.msra.mxu1 %v1759_v59 }
 0x1a8   : > { %v1130_v51 = vpop.f32.mrb[37].mxu0  ;;  %v1713_v60 = vmul.f32 %v4197_v35, %v1128_v49 }
 0x1a9   : > { %v1131_v52 = vpop.f32.mrb[38].mxu0 }
 0x1aa   : > { %v1714_v62 = vmul.f32 %v4199_v36, %v1131_v52  ;;  %v1133_v63 = vpop.f32.mrb[39].mxu0 }
 0x1ac   : > { %v1768_v0 = vpack.c.bf16 %v1714_v62, %v1713_v60 }
 0x1ae   : > { %3225 = vmatprep.subr.bf16.mxu1 %v1768_v0 }
 0x1af   : > { %v1136_v27 = vpop.f32.mrb[40].mxu0  ;;  %3226 = vmatpush3.bf16.msra.mxu1 %v1760_v6 }
 0x1b0   : > { %v1138_v31 = vpop.f32.mrb[41].mxu0  ;;  %v1715_v2 = vmul.f32 %v4205_v41, %v1136_v27  ;;  %v4316_v41 = vpop.permute.xlu0 %1617 }
 0x1b1   : > { %v1139_v1 = vpop.f32.mrb[42].mxu0 }
 0x1b2   : > { %v1716_v54 = vmul.f32 %v4207_v42, %v1139_v1  ;;  %v1141_v55 = vpop.f32.mrb[43].mxu0 }
 0x1b3   : > { %v1832_v55 = vunpack.c.l.s8.bf16 %v1796_v23 }
 0x1b4   : > { %v1769_v59 = vpack.c.bf16 %v1716_v54, %v1715_v2  ;;  %v1538_v21 = vpop.permute.xlu0 %1537 }
 0x1b6   : > { %3227 = vmatprep.subr.bf16.mxu1 %v1769_v59 }
 0x1b7   : > { %v1144_v35 = vpop.f32.mrb[44].mxu0  ;;  %3228 = vmatpush3.bf16.msra.mxu1 %v1761_v17 }
 0x1b8   : > { %v1146_v36 = vpop.f32.mrb[45].mxu0  ;;  %v1717_v16 = vmul.f32 %v4222_v57, %v1144_v35 }
 0x1b9   : > { %v1147_v10 = vpop.f32.mrb[46].mxu0 }
 0x1ba   : > { %v1718_v3 = vmul.f32 %v4224_v58, %v1147_v10  ;;  %v1149_v4 = vpop.f32.mrb[47].mxu0  ;;  %v1543_v58 = vpop.permute.xlu1 %1542 }
 0x1bc   : > { %v1770_v6 = vpack.c.bf16 %v1718_v3, %v1717_v16 }
 0x1be   : > { %3229 = vmatprep.subr.bf16.mxu1 %v1770_v6  ;;  %v4326_v25 = vpop.permute.xlu1 %1632  ;;  %v1795_v6 = vld [vmem:[%s4021_s7 + $0x20] sm:$0xff] }
 0x1bf   : > { %v1152_v42 = vpop.f32.mrb[48].mxu0  ;;  %3230 = vmatpush3.bf16.msra.mxu1 %v1762_v32 }
 0x1c0   : > { %v1154_v14 = vpop.f32.mrb[49].mxu0  ;;  %v1719_v17 = vmul.f32 %v4238_v7, %v1152_v42 }
 0x1c1   : > { %v1155_v15 = vpop.f32.mrb[50].mxu0 }
 0x1c2   : > { %v1720_v57 = vmul.f32 %v4240_v9, %v1155_v15  ;;  %v1157_v19 = vpop.f32.mrb[51].mxu0  ;;  %v4330_v9 = vpop.permute.xlu0 %1627  ;;  %v1831_v15 = vunpack.c.l.s8.bf16 %v1795_v6 }
 0x1c3   : > { %v1553_v43 = vpop.permute.xlu1 %1552  ;;  %v1836_v19 = vunpack.c.h.s8.bf16 %v1796_v23 }
 0x1c4   : > { %v1771_v20 = vpack.c.bf16 %v1720_v57, %v1719_v17 }
 0x1c6   : > { %3231 = vmatprep.subr.bf16.mxu1 %v1771_v20 }
 0x1c7   : > { %v1160_v24 = vpop.f32.mrb[52].mxu0  ;;  %3232 = vmatpush3.bf16.msra.mxu1 %v1763_v46  ;;  %v1548_v46 = vpop.permute.xlu0 %1547 }
 0x1c8   : > { %v1162_v33 = vpop.f32.mrb[53].mxu0  ;;  %v1721_v26 = vmul.f32 %v4257_v29, %v1160_v24  ;;  %v4337_v49 = vpop.permute.xlu1 %1642 }
 0x1c9   : > { %v1163_v34 = vpop.f32.mrb[54].mxu0 }
 0x1ca   : > { %v1722_v7 = vmul.f32 %v4259_v30, %v1163_v34  ;;  %v1165_v32 = vpop.f32.mrb[55].mxu0 }
 0x1cb   : > { %v4339_v51 = vpop.permute.xlu0 %1637 }
 0x1cc   : > { %v1772_v37 = vpack.c.bf16 %v1722_v7, %v1721_v26  ;;  %v1563_v62 = vpop.permute.xlu1 %1562  ;;  %v1800_v7 = vld [vmem:[%s4021_s7 + $0x48] sm:$0xff] }
 0x1ce   : > { %3233 = vmatprep.subr.bf16.mxu1 %v1772_v37  ;;  %v1835_v37 = vunpack.c.h.s8.bf16 %v1795_v6 }
 0x1cf   : > { %v1168_v38 = vpop.f32.mrb[56].mxu0  ;;  %3234 = vmatpush3.bf16.msra.mxu1 %v1764_v61  ;;  %v1558_v0 = vpop.permute.xlu0 %1557 }
 0x1d0   : > { %v1170_v44 = vpop.f32.mrb[57].mxu0  ;;  %v1723_v40 = vmul.f32 %v4271_v48, %v1168_v38 }
 0x1d1   : > { %v1171_v39 = vpop.f32.mrb[58].mxu0 }
 0x1d2   : > { %v1724_v29 = vmul.f32 %v4273_v50, %v1171_v39  ;;  %v1173_v30 = vpop.f32.mrb[59].mxu0  ;;  %v1791_v50 = vld [vmem:[%s4021_s7] sm:$0xff] }
 0x1d3   : > { %v1823_v27 = vunpack.c.l.s8.bf16 %v1791_v50  ;;  %v4357_v54 = vpop.permute.xlu0 %1647 }
 0x1d4   : > { %v1773_v45 = vpack.c.bf16 %v1724_v29, %v1723_v40 }
 0x1d6   : > { %3235 = vmatprep.subr.bf16.mxu1 %v1773_v45 }
 0x1d7   : > { %v1176_v52 = vpop.f32.mrb[60].mxu0  ;;  %3236 = vmatpush3.bf16.msra.mxu1 %v1765_v13  ;;  %v1568_v36 = vpop.permute.xlu0 %1567 }
 0x1d8   : > { %v1178_v53 = vpop.f32.mrb[61].mxu0  ;;  %v1725_v61 = vmul.f32 %v4285_v11, %v1176_v52  ;;  %v4351_v11 = vpop.permute.xlu1 %1652  ;;  %v1799_v52 = vld [vmem:[%s4021_s7 + $0x40] sm:$0xff] }
 0x1d9   : > { %v1179_v56 = vpop.f32.mrb[62].mxu0 }
 0x1da   : > { %v1726_v48 = vmul.f32 %v4287_v12, %v1179_v56  ;;  %v1181_v60 = vpop.f32.mrb[63].mxu0  ;;  %v1839_v56 = vunpack.c.l.s8.bf16 %v1799_v52 }
 0x1db   : > { %v4371_v17 = vpop.permute.xlu0 %1657 }
 0x1dc   : > { %v1774_v63 = vpack.c.bf16 %v1726_v48, %v1725_v61  ;;  %v1573_v59 = vpop.permute.xlu1 %1572  ;;  %v1844_v48 = vunpack.c.h.s8.bf16 %v1800_v7 }
 0x1de   : > { %3237 = vmatprep.subr.bf16.mxu1 %v1774_v63 }
 0x1df   : > { %v1184_v31 = vpop.f32.mrb[64].mxu0  ;;  %3238 = vmatpush3.bf16.msra.mxu1 %v1766_v28  ;;  %v1827_v28 = vunpack.c.h.s8.bf16 %v1791_v50  ;;  %v1578_v32 = vpop.permute.xlu0 %1577 }
 0x1e0   : > { %v1186_v8 = vpop.f32.mrb[65].mxu0  ;;  %v4353_v12 = vmul.f32 %v1538_v21, %v1184_v31  ;;  %v4369_v14 = vpop.permute.xlu1 %1662 }
 0x1e1   : > { %v1187_v13 = vpop.f32.mrb[66].mxu0  ;;  %v1804_v8 = vld [vmem:[%s4021_s7 + $0x68] sm:$0xff] }
 0x1e2   : > { %v4355_v1 = vmul.f32 %v1543_v58, %v1187_v13  ;;  %v1189_v2 = vpop.f32.mrb[67].mxu0  ;;  %1952 = vmatmul.mubr.bf16.vlgmr.msra.gmra.mrb[0].mxu1 %v1823_v27 }
 0x1e3   : > { %1959 = vmatprep.mubr.bf16.mxu1 %v1828_v5  ;;  %v4386_v45 = vpop.permute.xlu0 %1667  ;;  %v1843_v2 = vunpack.c.h.s8.bf16 %v1799_v52 }
 0x1e4   : > { %v1775_v22 = vpack.c.bf16 %v4355_v1, %v4353_v12  ;;  %v1583_v34 = vpop.permute.xlu1 %1582 }
 0x1e7   : > { %v1192_v47 = vpop.f32.mrb[68].mxu0 }
 0x1e8   : > { %v1194_v35 = vpop.f32.mrb[69].mxu0  ;;  %v4362_v16 = vmul.f32 %v1548_v46, %v1192_v47  ;;  %v4380_v39 = vpop.permute.xlu1 %1672  ;;  %v1848_v47 = vunpack.c.l.s8.bf16 %v1804_v8 }
 0x1e9   : > { %v1195_v10 = vpop.f32.mrb[70].mxu0 }
 0x1ea   : > { %v4364_v3 = vmul.f32 %v1553_v43, %v1195_v10  ;;  %v1197_v4 = vpop.f32.mrb[71].mxu0  ;;  %1960 = vmatmul.mubr.bf16.gmra.mrb[4].mxu1 %v1827_v28  ;;  %v1840_v43 = vunpack.c.l.s8.bf16 %v1800_v7 }
 0x1eb   : > { %1967 = vmatprep.mubr.bf16.mxu1 %v1832_v55  ;;  %v1803_v4 = vld [vmem:[%s4021_s7 + $0x60] sm:$0xff] }
 0x1ec   : > { %v1776_v42 = vpack.c.bf16 %v4364_v3, %v4362_v16  ;;  %v1593_v60 = vpop.permute.xlu1 %1592 }
 0x1ef   : > { %v1200_v57 = vpop.f32.mrb[72].mxu0 }
 0x1f0   : > { %v1202_v58 = vpop.f32.mrb[73].mxu0  ;;  %v4373_v21 = vmul.f32 %v1558_v0, %v1200_v57  ;;  %v4398_v13 = vpop.permute.xlu1 %1682 }
 0x1f1   : > { %v1203_v20 = vpop.f32.mrb[74].mxu0 }
 0x1f2   : > { %v4375_v24 = vmul.f32 %v1563_v62, %v1203_v20  ;;  %v1205_v33 = vpop.f32.mrb[75].mxu0  ;;  %1968 = vmatmul.mubr.bf16.gmra.mrb[8].mxu1 %v1831_v15  ;;  %v1588_v62 = vpop.permute.xlu0 %1587  ;;  %v1852_v20 = vunpack.c.h.s8.bf16 %v1804_v8  ;;  %v1807_v8 = vld [vmem:[%s4021_s7 + $0x80] sm:$0xff] }
 0x1f3   : > { %1975 = vmatprep.mubr.bf16.mxu1 %v1836_v19  ;;  %v1847_v19 = vunpack.c.l.s8.bf16 %v1803_v4 }
 0x1f4   : > { %v1777_v26 = vpack.c.bf16 %v4375_v24, %v4373_v21  ;;  %v1603_v6 = vpop.permute.xlu1 %1602 }
 0x1f6   : > { %v4400_v23 = vpop.permute.xlu0 %1677 }
 0x1f7   : > { %v1208_v38 = vpop.f32.mrb[76].mxu0 }
 0x1f8   : > { %v1210_v44 = vpop.f32.mrb[77].mxu0  ;;  %v4382_v40 = vmul.f32 %v1568_v36, %v1208_v38  ;;  %v4409_v7 = vpop.permute.xlu1 %1692 }
 0x1f9   : > { %v1211_v46 = vpop.f32.mrb[78].mxu0 }
 0x1fa   : > { %v4384_v29 = vmul.f32 %v1573_v59, %v1211_v46  ;;  %v1213_v30 = vpop.f32.mrb[79].mxu0  ;;  %1976 = vmatmul.mubr.bf16.gmra.mrb[12].mxu1 %v1835_v37  ;;  %v1598_v57 = vpop.permute.xlu0 %1597  ;;  %v1808_v46 = vld [vmem:[%s4021_s7 + $0x88] sm:$0xff] }
 0x1fb   : > { %1983 = vmatprep.mubr.bf16.mxu1 %v1840_v43  ;;  %v1851_v30 = vunpack.c.h.s8.bf16 %v1803_v4 }
 0x1fc   : > { %v1778_v53 = vpack.c.bf16 %v4384_v29, %v4382_v40 }
 0x1fe   : > { %v4415_v43 = vpop.permute.xlu0 %1687 }
 0x1ff   : > { %v1216_v61 = vpop.f32.mrb[80].mxu0 }
 0x200   : > { %v1218_v50 = vpop.f32.mrb[81].mxu0  ;;  %v4391_v0 = vmul.f32 %v1578_v32, %v1216_v61  ;;  %v1613_v61 = vpop.permute.xlu1 %1612 }
 0x201   : > { %v1219_v63 = vpop.f32.mrb[82].mxu0 }
 0x202   : > { %v4393_v27 = vmul.f32 %v1583_v34, %v1219_v63  ;;  %v1221_v31 = vpop.f32.mrb[83].mxu0  ;;  %1984 = vmatmul.mubr.bf16.gmra.mrb[16].mxu1 %v1839_v56  ;;  %v1856_v56 = vunpack.c.l.s8.bf16 %v1808_v46 }
 0x203   : > { %1991 = vmatprep.mubr.bf16.mxu1 %v1844_v48 }
 0x204   : > { %v1779_v5 = vpack.c.bf16 %v4393_v27, %v4391_v0 }
 0x207   : > { %v1224_v28 = vpop.f32.mrb[84].mxu0 }
 0x208   : > { %v1226_v55 = vpop.f32.mrb[85].mxu0  ;;  %v4402_v35 = vmul.f32 %v1588_v62, %v1224_v28  ;;  %v1855_v28 = vunpack.c.l.s8.bf16 %v1807_v8 }
 0x209   : > { %v1227_v59 = vpop.f32.mrb[86].mxu0  ;;  %v1860_v55 = vunpack.c.h.s8.bf16 %v1808_v46 }
 0x20a   : > { %v4404_v36 = vmul.f32 %v1593_v60, %v1227_v59  ;;  %v1229_v10 = vpop.f32.mrb[87].mxu0  ;;  %1992 = vmatmul.mubr.bf16.gmra.mrb[20].mxu1 %v1843_v2  ;;  %v1608_v60 = vpop.permute.xlu0 %1607 }
 0x20b   : > { %1999 = vmatprep.mubr.bf16.mxu1 %v1848_v47 }
 0x20c   : > { %v1780_v15 = vpack.c.bf16 %v4404_v36, %v4402_v35 }
 0x20f   : > { %v1232_v58 = vpop.f32.mrb[88].mxu0 }
 0x210   : > { %v1234_v33 = vpop.f32.mrb[89].mxu0  ;;  %v4411_v32 = vmul.f32 %v1598_v57, %v1232_v58  ;;  %v1812_v58 = vld [vmem:[%s4021_s7 + $0xa8] sm:$0xff] }
 0x211   : > { %v1235_v34 = vpop.f32.mrb[90].mxu0  ;;  %v1868_v12 = vunpack.c.h.s8.bf16 %v1812_v58 }
 0x212   : > { %v4413_v37 = vmul.f32 %v1603_v6, %v1235_v34  ;;  %v1237_v38 = vpop.f32.mrb[91].mxu0  ;;  %2000 = vmatmul.mubr.bf16.gmra.mrb[24].mxu1 %v1847_v19  ;;  %v1864_v34 = vunpack.c.l.s8.bf16 %v1812_v58 }
 0x213   : > { %2007 = vmatprep.mubr.bf16.mxu1 %v1852_v20  ;;  %v1859_v20 = vunpack.c.h.s8.bf16 %v1807_v8 }
 0x214   : > { %v1781_v44 = vpack.c.bf16 %v4413_v37, %v4411_v32  ;;  %v1798_v37 = vld [vmem:[%s4021_s7 + $0x38] sm:$0xff] }
 0x217   : > { %v1240_v52 = vpop.f32.mrb[92].mxu0 }
 0x218   : > { %v1242_v48 = vpop.f32.mrb[93].mxu0  ;;  %v4420_v62 = vmul.f32 %v1608_v60, %v1240_v52  ;;  %v1811_v52 = vld [vmem:[%s4021_s7 + $0xa0] sm:$0xff] }
 0x219   : > { %v1243_v50 = vpop.f32.mrb[94].mxu0  ;;  %v1867_v8 = vunpack.c.h.s8.bf16 %v1811_v52 }
 0x21a   : > { %v4422_v63 = vmul.f32 %v1613_v61, %v1243_v50  ;;  %v1245_v31 = vpop.f32.mrb[95].mxu0  ;;  %2008 = vmatmul.mubr.bf16.gmra.mrb[28].mxu1 %v1851_v30  ;;  %v1863_v61 = vunpack.c.l.s8.bf16 %v1811_v52  ;;  %v1794_v52 = vld [vmem:[%s4021_s7 + $0x18] sm:$0xff] }
 0x21b   : > { %2015 = vmatprep.mubr.bf16.mxu1 %v1856_v56  ;;  %v1816_v31 = vld [vmem:[%s4021_s7 + $0xc8] sm:$0xff]  ;;  %v1826_v35 = vunpack.c.l.s8.bf16 %v1794_v52  ;;  %v1830_v32 = vunpack.c.h.s8.bf16 %v1794_v52 }
 0x21c   : > { %v1782_v2 = vpack.c.bf16 %v4422_v63, %v4420_v62  ;;  %v1872_v16 = vunpack.c.l.s8.bf16 %v1816_v31  ;;  %v1876_v21 = vunpack.c.h.s8.bf16 %v1816_v31  ;;  %v1801_v63 = vld [vmem:[%s4021_s7 + $0x50] sm:$0xff] }
 0x21f   : > { %v1248_v47 = vpop.f32.mrb[96].mxu0 }
 0x220   : > { %v1250_v59 = vpop.f32.mrb[97].mxu0  ;;  %v1743_v4 = vmul.f32 %v4316_v41, %v1248_v47 }
 0x221   : > { %v1251_v10 = vpop.f32.mrb[98].mxu0 }
 0x222   : > { %v1744_v6 = vmul.f32 %v4314_v18, %v1251_v10  ;;  %v1253_v57 = vpop.f32.mrb[99].mxu0  ;;  %2016 = vmatmul.mubr.bf16.gmra.mrb[32].mxu1 %v1855_v28 }
 0x223   : > { %2023 = vmatprep.mubr.bf16.mxu1 %v1860_v55  ;;  %v1815_v55 = vld [vmem:[%s4021_s7 + $0xc0] sm:$0xff] }
 0x224   : > { %v1783_v19 = vpack.c.bf16 %v1744_v6, %v1743_v4  ;;  %v1871_v10 = vunpack.c.l.s8.bf16 %v1815_v55  ;;  %v1875_v58 = vunpack.c.h.s8.bf16 %v1815_v55 }
 0x226   : > { %3335 = vmatprep.subr.bf16.mxu1 %v1783_v19  ;;  %v1820_v19 = vld [vmem:[%s4021_s7 + $0xe8] sm:$0xff] }
 0x227   : > { %v1256_v33 = vpop.f32.mrb[100].mxu0  ;;  %3336 = vmatpush3.bf16.msra.mxu1 %v1775_v22  ;;  %v1880_v40 = vunpack.c.l.s8.bf16 %v1820_v19  ;;  %v1884_v0 = vunpack.c.h.s8.bf16 %v1820_v19 }
 0x228   : > { %v1258_v38 = vpop.f32.mrb[101].mxu0  ;;  %v1745_v41 = vmul.f32 %v4330_v9, %v1256_v33 }
 0x229   : > { %v1259_v46 = vpop.f32.mrb[102].mxu0 }
 0x22a   : > { %v1746_v18 = vmul.f32 %v4326_v25, %v1259_v46  ;;  %2024 = vmatmul.mubr.bf16.gmra.mrb[36].mxu1 %v1859_v20  ;;  %v1261_v30 = vpop.f32.mrb[103].mxu0 }
 0x22b   : > { %2031 = vmatprep.mubr.bf16.mxu1 %v1864_v34  ;;  %v1819_v34 = vld [vmem:[%s4021_s7 + $0xe0] sm:$0xff] }
 0x22c   : > { %v1784_v56 = vpack.c.bf16 %v1746_v18, %v1745_v41  ;;  %v1879_v46 = vunpack.c.l.s8.bf16 %v1819_v34 }
 0x22e   : > { %3337 = vmatprep.subr.bf16.mxu1 %v1784_v56  ;;  %v1883_v56 = vunpack.c.h.s8.bf16 %v1819_v34 }
 0x22f   : > { %v1264_v48 = vpop.f32.mrb[104].mxu0  ;;  %3338 = vmatpush3.bf16.msra.mxu1 %v1776_v42 }
 0x230   : > { %v1266_v1 = vpop.f32.mrb[105].mxu0  ;;  %v1747_v9 = vmul.f32 %v4339_v51, %v1264_v48 }
 0x231   : > { %v1267_v22 = vpop.f32.mrb[106].mxu0 }
 0x232   : > { %v1748_v25 = vmul.f32 %v4337_v49, %v1267_v22  ;;  %2032 = vmatmul.mubr.bf16.gmra.mrb[40].mxu1 %v1863_v61  ;;  %v1269_v60 = vpop.f32.mrb[107].mxu0 }
 0x233   : > { %2039 = vmatprep.mubr.bf16.mxu1 %v1868_v12  ;;  %v1793_v12 = vld [vmem:[%s4021_s7 + $0x10] sm:$0xff]  ;;  %v1802_v60 = vld [vmem:[%s4021_s7 + $0x58] sm:$0xff] }
 0x234   : > { %v1785_v50 = vpack.c.bf16 %v1748_v25, %v1747_v9  ;;  %v1825_v22 = vunpack.c.l.s8.bf16 %v1793_v12  ;;  %v1838_v25 = vunpack.c.h.s8.bf16 %v1798_v37  ;;  %v1842_v62 = vunpack.c.l.s8.bf16 %v1802_v60 }
 0x235   : > { %v1846_v31 = vunpack.c.h.s8.bf16 %v1802_v60 }
 0x236   : > { %3339 = vmatprep.subr.bf16.mxu1 %v1785_v50 }
 0x237   : > { %v1272_v28 = vpop.f32.mrb[108].mxu0  ;;  %3340 = vmatpush3.bf16.msra.mxu1 %v1777_v26 }
 0x238   : > { %v1274_v3 = vpop.f32.mrb[109].mxu0  ;;  %v1749_v51 = vmul.f32 %v4357_v54, %v1272_v28  ;;  %v1845_v28 = vunpack.c.h.s8.bf16 %v1801_v63 }
 0x239   : > { %v1275_v42 = vpop.f32.mrb[110].mxu0  ;;  %v1805_v3 = vld [vmem:[%s4021_s7 + $0x70] sm:$0xff] }
 0x23a   : > { %v1750_v49 = vmul.f32 %v4351_v11, %v1275_v42  ;;  %2040 = vmatmul.mubr.bf16.gmra.mrb[44].mxu1 %v1867_v8  ;;  %v1277_v47 = vpop.f32.mrb[111].mxu0  ;;  %v1806_v8 = vld [vmem:[%s4021_s7 + $0x78] sm:$0xff]  ;;  %v1849_v42 = vunpack.c.l.s8.bf16 %v1805_v3 }
 0x23b   : > { %2047 = vmatprep.mubr.bf16.mxu1 %v1872_v16  ;;  %v1850_v16 = vunpack.c.l.s8.bf16 %v1806_v8  ;;  %v1853_v47 = vunpack.c.h.s8.bf16 %v1805_v3 }
 0x23c   : > { %v1786_v59 = vpack.c.bf16 %v1750_v49, %v1749_v51  ;;  %v1854_v51 = vunpack.c.h.s8.bf16 %v1806_v8  ;;  %v1810_v49 = vld [vmem:[%s4021_s7 + $0x98] sm:$0xff] }
 0x23d   : > { %v1858_v55 = vunpack.c.l.s8.bf16 %v1810_v49 }
 0x23e   : > { %3341 = vmatprep.subr.bf16.mxu1 %v1786_v59  ;;  %v1809_v59 = vld [vmem:[%s4021_s7 + $0x90] sm:$0xff] }
 0x23f   : > { %v1280_v4 = vpop.f32.mrb[112].mxu0  ;;  %3342 = vmatpush3.bf16.msra.mxu1 %v1778_v53 }
 0x240   : > { %v1282_v24 = vpop.f32.mrb[113].mxu0  ;;  %v1751_v54 = vmul.f32 %v4371_v17, %v1280_v4  ;;  %v1862_v4 = vunpack.c.h.s8.bf16 %v1810_v49 }
 0x241   : > { %v1283_v26 = vpop.f32.mrb[114].mxu0  ;;  %v1861_v24 = vunpack.c.h.s8.bf16 %v1809_v59 }
 0x242   : > { %v1752_v11 = vmul.f32 %v4369_v14, %v1283_v26  ;;  %2048 = vmatmul.mubr.bf16.gmra.mrb[48].mxu1 %v1871_v10  ;;  %v1285_v6 = vpop.f32.mrb[115].mxu0  ;;  %v1857_v10 = vunpack.c.l.s8.bf16 %v1809_v59 }
 0x243   : > { %2055 = vmatprep.mubr.bf16.mxu1 %v1876_v21  ;;  %v1814_v21 = vld [vmem:[%s4021_s7 + $0xb8] sm:$0xff] }
 0x244   : > { %v1787_v57 = vpack.c.bf16 %v1752_v11, %v1751_v54  ;;  %v1866_v26 = vunpack.c.l.s8.bf16 %v1814_v21  ;;  %v1813_v54 = vld [vmem:[%s4021_s7 + $0xb0] sm:$0xff]  ;;  %v1870_v6 = vunpack.c.h.s8.bf16 %v1814_v21 }
 0x245   : > { %v1865_v11 = vunpack.c.l.s8.bf16 %v1813_v54 }
 0x246   : > { %3343 = vmatprep.subr.bf16.mxu1 %v1787_v57  ;;  %v1818_v57 = vld [vmem:[%s4021_s7 + $0xd8] sm:$0xff] }
 0x247   : > { %v1288_v20 = vpop.f32.mrb[116].mxu0  ;;  %3344 = vmatpush3.bf16.msra.mxu1 %v1779_v5 }
 0x248   : > { %v1290_v29 = vpop.f32.mrb[117].mxu0  ;;  %v1753_v17 = vmul.f32 %v4386_v45, %v1288_v20 }
 0x249   : > { %v1291_v53 = vpop.f32.mrb[118].mxu0 }
 0x24a   : > { %v1754_v14 = vmul.f32 %v4380_v39, %v1291_v53  ;;  %2056 = vmatmul.mubr.bf16.gmra.mrb[52].mxu1 %v1875_v58  ;;  %v1293_v33 = vpop.f32.mrb[119].mxu0  ;;  %v1869_v58 = vunpack.c.h.s8.bf16 %v1813_v54 }
 0x24b   : > { %2063 = vmatprep.mubr.bf16.mxu1 %v1880_v40  ;;  %v1874_v40 = vunpack.c.l.s8.bf16 %v1818_v57  ;;  %v1817_v33 = vld [vmem:[%s4021_s7 + $0xd0] sm:$0xff] }
 0x24c   : > { %v1788_v38 = vpack.c.bf16 %v1754_v14, %v1753_v17 }
 0x24e   : > { %3345 = vmatprep.subr.bf16.mxu1 %v1788_v38  ;;  %v1873_v38 = vunpack.c.l.s8.bf16 %v1817_v33 }
 0x24f   : > { %v1296_v41 = vpop.f32.mrb[120].mxu0  ;;  %3346 = vmatpush3.bf16.msra.mxu1 %v1780_v15 }
 0x250   : > { %v1298_v27 = vpop.f32.mrb[121].mxu0  ;;  %v1755_v45 = vmul.f32 %v4400_v23, %v1296_v41  ;;  %v1878_v41 = vunpack.c.h.s8.bf16 %v1818_v57 }
 0x251   : > { %v1299_v5 = vpop.f32.mrb[122].mxu0 }
 0x252   : > { %v1756_v39 = vmul.f32 %v4398_v13, %v1299_v5  ;;  %2064 = vmatmul.mubr.bf16.gmra.mrb[56].mxu1 %v1879_v46  ;;  %v1301_v18 = vpop.f32.mrb[123].mxu0 }
 0x253   : > { %2071 = vmatprep.mubr.bf16.mxu1 %v1884_v0 }
 0x254   : > { %v1789_v30 = vpack.c.bf16 %v1756_v39, %v1755_v45  ;;  %v1822_v39 = vld [vmem:[%s4021_s7 + $0xf8] sm:$0xff] }
 0x256   : > { %3347 = vmatprep.subr.bf16.mxu1 %v1789_v30  ;;  %v1877_v30 = vunpack.c.h.s8.bf16 %v1817_v33 }
 0x257   : > { %v1304_v61 = vpop.f32.mrb[124].mxu0  ;;  %3348 = vmatpush3.bf16.msra.mxu1 %v1781_v44  ;;  %v1797_v44 = vld [vmem:[%s4021_s7 + $0x30] sm:$0xff] }
 0x258   : > { %v1306_v36 = vpop.f32.mrb[125].mxu0  ;;  %v1757_v23 = vmul.f32 %v4415_v43, %v1304_v61  ;;  %v1829_v43 = vunpack.c.h.s8.bf16 %v1793_v12  ;;  %v1833_v9 = vunpack.c.l.s8.bf16 %v1797_v44  ;;  %v1837_v50 = vunpack.c.h.s8.bf16 %v1797_v44 }
 0x259   : > { %v1307_v15 = vpop.f32.mrb[126].mxu0 }
 0x25a   : > { %v1758_v13 = vmul.f32 %v4409_v7, %v1307_v15  ;;  %2072 = vmatmul.mubr.bf16.gmra.mrb[60].mxu1 %v1883_v56  ;;  %v1309_v48 = vpop.f32.mrb[127].mxu0  ;;  %v1834_v7 = vunpack.c.l.s8.bf16 %v1798_v37  ;;  %v1882_v56 = vunpack.c.l.s8.bf16 %v1822_v39 }
 0x25b   : > { %2112 = vmatprep.mubr.bf16.mxu1 %v1826_v35 }
 0x25c   : > { %v1790_v1 = vpack.c.bf16 %v1758_v13, %v1757_v23  ;;  %v1821_v23 = vld [vmem:[%s4021_s7 + $0xf0] sm:$0xff] }
 0x25d   : > { %v1881_v48 = vunpack.c.l.s8.bf16 %v1821_v23  ;;  %v1885_v44 = vunpack.c.h.s8.bf16 %v1821_v23 }
 0x25e   : > { %3349 = vmatprep.subr.bf16.mxu1 %v1790_v1  ;;  %v1886_v1 = vunpack.c.h.s8.bf16 %v1822_v39 }
 0x25f   : > { %3350 = vmatpush3.bf16.msra.mxu1 %v1782_v2  ;;  %v1841_v2 = vunpack.c.l.s8.bf16 %v1801_v63 }
 0x262   : > { %2113 = vmatmul.mubr.bf16.vlgmr.msra.gmra.mrb[64].mxu1 %v1825_v22 }
 0x263   : > { %2120 = vmatprep.mubr.bf16.mxu1 %v1830_v32 }
 0x26a   : > { %2121 = vmatmul.mubr.bf16.gmra.mrb[68].mxu1 %v1829_v43 }
 0x26b   : > { %2128 = vmatprep.mubr.bf16.mxu1 %v1834_v7 }
 0x272   : > { %2129 = vmatmul.mubr.bf16.gmra.mrb[72].mxu1 %v1833_v9 }
 0x273   : > { %2136 = vmatprep.mubr.bf16.mxu1 %v1838_v25 }
 0x27a   : > { %2137 = vmatmul.mubr.bf16.gmra.mrb[76].mxu1 %v1837_v50 }
 0x27b   : > { %2144 = vmatprep.mubr.bf16.mxu1 %v1842_v62 }
 0x282   : > { %2145 = vmatmul.mubr.bf16.gmra.mrb[80].mxu1 %v1841_v2 }
 0x283   : > { %2152 = vmatprep.mubr.bf16.mxu1 %v1846_v31 }
 0x28a   : > { %2153 = vmatmul.mubr.bf16.gmra.mrb[84].mxu1 %v1845_v28 }
 0x28b   : > { %2160 = vmatprep.mubr.bf16.mxu1 %v1850_v16 }
 0x292   : > { %2161 = vmatmul.mubr.bf16.gmra.mrb[88].mxu1 %v1849_v42 }
 0x293   : > { %2168 = vmatprep.mubr.bf16.mxu1 %v1854_v51 }
 0x29a   : > { %2169 = vmatmul.mubr.bf16.gmra.mrb[92].mxu1 %v1853_v47 }
 0x29b   : > { %2176 = vmatprep.mubr.bf16.mxu1 %v1858_v55 }
 0x2a2   : > { %2177 = vmatmul.mubr.bf16.gmra.mrb[96].mxu1 %v1857_v10 }
 0x2a3   : > { %2184 = vmatprep.mubr.bf16.mxu1 %v1862_v4 }
 0x2aa   : > { %2185 = vmatmul.mubr.bf16.gmra.mrb[100].mxu1 %v1861_v24 }
 0x2ab   : > { %2192 = vmatprep.mubr.bf16.mxu1 %v1866_v26 }
 0x2b2   : > { %2193 = vmatmul.mubr.bf16.gmra.mrb[104].mxu1 %v1865_v11 }
 0x2b3   : > { %2200 = vmatprep.mubr.bf16.mxu1 %v1870_v6 }
 0x2b5   : > { %v3239_v19 = vpop.f32.mrb[0].mxu1 }
 0x2b6   : > { %v3240_v20 = vpop.f32.mrb[1].mxu1 }
 0x2b7   : > { %v4486_v29 = vadd.f32 %v3240_v20, %v3239_v19  ;;  %v3242_v53 = vpop.f32.mrb[2].mxu1 }
 0x2b8   : > { %v3243_v17 = vpop.f32.mrb[3].mxu1 }
 0x2b9   : > { %v4488_v14 = vadd.f32 %v3243_v17, %v3242_v53 }
 0x2ba   : > { %2201 = vmatmul.mubr.bf16.gmra.mrb[108].mxu1 %v1869_v58 }
 0x2bb   : > { %2208 = vmatprep.mubr.bf16.mxu1 %v1874_v40 }
 0x2bd   : > { %v3245_v34 = vpop.f32.mrb[4].mxu1 }
 0x2be   : > { %v3246_v46 = vpop.f32.mrb[5].mxu1 }
 0x2bf   : > { %v4491_v0 = vadd.f32 %v3246_v46, %v3245_v34  ;;  %v3248_v27 = vpop.f32.mrb[6].mxu1 }
 0x2c0   : > { %v3249_v5 = vpop.f32.mrb[7].mxu1 }
 0x2c1   : > { %v4493_v45 = vadd.f32 %v3249_v5, %v3248_v27 }
 0x2c2   : > { %2209 = vmatmul.mubr.bf16.gmra.mrb[112].mxu1 %v1873_v38 }
 0x2c3   : > { %2216 = vmatprep.mubr.bf16.mxu1 %v1878_v41 }
 0x2c5   : > { %v3251_v18 = vpop.f32.mrb[8].mxu1 }
 0x2c6   : > { %v3252_v52 = vpop.f32.mrb[9].mxu1 }
 0x2c7   : > { %v4496_v61 = vadd.f32 %v3252_v52, %v3251_v18  ;;  %v3254_v35 = vpop.f32.mrb[10].mxu1 }
 0x2c8   : > { %v3255_v36 = vpop.f32.mrb[11].mxu1 }
 0x2c9   : > { %v4498_v15 = vadd.f32 %v3255_v36, %v3254_v35 }
 0x2ca   : > { %2217 = vmatmul.mubr.bf16.gmra.mrb[116].mxu1 %v1877_v30 }
 0x2cb   : > { %2224 = vmatprep.mubr.bf16.mxu1 %v1882_v56 }
 0x2cd   : > { %v3257_v13 = vpop.f32.mrb[12].mxu1 }
 0x2ce   : > { %v3258_v12 = vpop.f32.mrb[13].mxu1 }
 0x2cf   : > { %v4501_v22 = vadd.f32 %v3258_v12, %v3257_v13  ;;  %v3260_v32 = vpop.f32.mrb[14].mxu1 }
 0x2d0   : > { %v3261_v37 = vpop.f32.mrb[15].mxu1 }
 0x2d1   : > { %v4503_v43 = vadd.f32 %v3261_v37, %v3260_v32 }
 0x2d2   : > { %2225 = vmatmul.mubr.bf16.gmra.mrb[120].mxu1 %v1881_v48 }
 0x2d3   : > { %2232 = vmatprep.mubr.bf16.mxu1 %v1886_v1 }
 0x2d5   : > { %v3263_v7 = vpop.f32.mrb[16].mxu1 }
 0x2d6   : > { %v3264_v9 = vpop.f32.mrb[17].mxu1 }
 0x2d7   : > { %v4505_v25 = vadd.f32 %v3264_v9, %v3263_v7  ;;  %v3266_v60 = vpop.f32.mrb[18].mxu1 }
 0x2d8   : > { %v3267_v50 = vpop.f32.mrb[19].mxu1 }
 0x2d9   : > { %v4507_v62 = vadd.f32 %v3267_v50, %v3266_v60 }
 0x2da   : > { %2233 = vmatmul.mubr.bf16.gmra.mrb[124].mxu1 %v1885_v44 }
 0x2dd   : > { %v3269_v63 = vpop.f32.mrb[20].mxu1 }
 0x2de   : > { %v3270_v2 = vpop.f32.mrb[21].mxu1 }
 0x2df   : > { %v4509_v31 = vadd.f32 %v3270_v2, %v3269_v63  ;;  %v3272_v8 = vpop.f32.mrb[22].mxu1 }
 0x2e0   : > { %v3273_v28 = vpop.f32.mrb[23].mxu1 }
 0x2e1   : > { %v4511_v16 = vadd.f32 %v3273_v28, %v3272_v8 }
 0x2e5   : > { %v3275_v3 = vpop.f32.mrb[24].mxu1 }
 0x2e6   : > { %v3276_v42 = vpop.f32.mrb[25].mxu1 }
 0x2e7   : > { %v4513_v51 = vadd.f32 %v3276_v42, %v3275_v3  ;;  %v3278_v49 = vpop.f32.mrb[26].mxu1 }
 0x2e8   : > { %v3279_v47 = vpop.f32.mrb[27].mxu1 }
 0x2e9   : > { %v4515_v55 = vadd.f32 %v3279_v47, %v3278_v49 }
 0x2ed   : > { %v3281_v59 = vpop.f32.mrb[28].mxu1 }
 0x2ee   : > { %v3282_v10 = vpop.f32.mrb[29].mxu1 }
 0x2ef   : > { %v4517_v4 = vadd.f32 %v3282_v10, %v3281_v59  ;;  %v3284_v21 = vpop.f32.mrb[30].mxu1 }
 0x2f0   : > { %v3285_v24 = vpop.f32.mrb[31].mxu1 }
 0x2f1   : > { %v4519_v26 = vadd.f32 %v3285_v24, %v3284_v21 }
 0x2f5   : > { %v3287_v54 = vpop.f32.mrb[32].mxu1 }
 0x2f6   : > { %v3288_v11 = vpop.f32.mrb[33].mxu1 }
 0x2f7   : > { %v4521_v6 = vadd.f32 %v3288_v11, %v3287_v54  ;;  %v3290_v57 = vpop.f32.mrb[34].mxu1 }
 0x2f8   : > { %v3291_v19 = vpop.f32.mrb[35].mxu1 }
 0x2f9   : > { %v4523_v58 = vadd.f32 %v3291_v19, %v3290_v57 }
 0x2fd   : > { %v3293_v20 = vpop.f32.mrb[36].mxu1 }
 0x2fe   : > { %v3294_v40 = vpop.f32.mrb[37].mxu1 }
 0x2ff   : > { %v4525_v53 = vadd.f32 %v3294_v40, %v3293_v20  ;;  %v3296_v17 = vpop.f32.mrb[38].mxu1  ;;  %v1887_v20 = vld [vmem:[#allocation2] sm:$0xff] }
 0x300   : > { %v3297_v33 = vpop.f32.mrb[39].mxu1 }
 0x301   : > { %v4527_v34 = vadd.f32 %v3297_v33, %v3296_v17 }
 0x305   : > { %v3299_v38 = vpop.f32.mrb[40].mxu1 }
 0x306   : > { %v3300_v46 = vpop.f32.mrb[41].mxu1 }
 0x307   : > { %v4529_v41 = vadd.f32 %v3300_v46, %v3299_v38  ;;  %v3302_v27 = vpop.f32.mrb[42].mxu1  ;;  %v1888_v38 = vld [vmem:[#allocation2 + $0x8] sm:$0xff] }
 0x308   : > { %v3303_v5 = vpop.f32.mrb[43].mxu1 }
 0x309   : > { %v4531_v39 = vadd.f32 %v3303_v5, %v3302_v27 }
 0x30d   : > { %v3305_v18 = vpop.f32.mrb[44].mxu1 }
 0x30e   : > { %v3306_v30 = vpop.f32.mrb[45].mxu1 }
 0x30f   : > { %v4533_v52 = vadd.f32 %v3306_v30, %v3305_v18  ;;  %v3308_v56 = vpop.f32.mrb[46].mxu1 }
 0x310   : > { %v3309_v35 = vpop.f32.mrb[47].mxu1 }
 0x311   : > { %v4535_v36 = vadd.f32 %v3309_v35, %v3308_v56 }
 0x315   : > { %v3311_v23 = vpop.f32.mrb[48].mxu1 }
 0x316   : > { %v3312_v13 = vpop.f32.mrb[49].mxu1 }
 0x317   : > { %v4537_v48 = vadd.f32 %v3312_v13, %v3311_v23  ;;  %v3314_v12 = vpop.f32.mrb[50].mxu1  ;;  %v1889_v23 = vld [vmem:[#allocation2 + $0x10] sm:$0xff] }
 0x318   : > { %v3315_v1 = vpop.f32.mrb[51].mxu1 }
 0x319   : > { %v4539_v32 = vadd.f32 %v3315_v1, %v3314_v12 }
 0x31d   : > { %v3317_v37 = vpop.f32.mrb[52].mxu1 }
 0x31e   : > { %v3318_v7 = vpop.f32.mrb[53].mxu1 }
 0x31f   : > { %v4541_v44 = vadd.f32 %v3318_v7, %v3317_v37  ;;  %v3320_v9 = vpop.f32.mrb[54].mxu1  ;;  %v1890_v37 = vld [vmem:[#allocation2 + $0x18] sm:$0xff] }
 0x320   : > { %v3321_v60 = vpop.f32.mrb[55].mxu1 }
 0x321   : > { %v4543_v50 = vadd.f32 %v3321_v60, %v3320_v9 }
 0x325   : > { %v3323_v63 = vpop.f32.mrb[56].mxu1 }
 0x326   : > { %v3324_v2 = vpop.f32.mrb[57].mxu1 }
 0x327   : > { %v4545_v8 = vadd.f32 %v3324_v2, %v3323_v63  ;;  %v3326_v28 = vpop.f32.mrb[58].mxu1 }
 0x328   : > { %v3327_v3 = vpop.f32.mrb[59].mxu1 }
 0x329   : > { %v4547_v42 = vadd.f32 %v3327_v3, %v3326_v28  ;;  %v1891_v28 = vld [vmem:[#allocation2 + $0x20] sm:$0xff] }
 0x32d   : > { %v3329_v49 = vpop.f32.mrb[60].mxu1 }
 0x32e   : > { %v3330_v47 = vpop.f32.mrb[61].mxu1 }
 0x32f   : > { %v4549_v59 = vadd.f32 %v3330_v47, %v3329_v49  ;;  %v3332_v10 = vpop.f32.mrb[62].mxu1 }
 0x330   : > { %v3333_v21 = vpop.f32.mrb[63].mxu1 }
 0x331   : > { %v4551_v24 = vadd.f32 %v3333_v21, %v3332_v10  ;;  %v1892_v10 = vld [vmem:[#allocation2 + $0x28] sm:$0xff] }
 0x335   : > { %v3351_v54 = vpop.f32.mrb[64].mxu1 }
 0x336   : > { %v3352_v11 = vpop.f32.mrb[65].mxu1 }
 0x337   : > { %v3353_v57 = vadd.f32 %v3352_v11, %v3351_v54  ;;  %v3354_v19 = vpop.f32.mrb[66].mxu1 }
 0x338   : > { %v3355_v40 = vpop.f32.mrb[67].mxu1 }
 0x339   : > { %v2115_v17 = vadd.f32 %v3353_v57, %v4486_v29  ;;  %v3356_v33 = vadd.f32 %v3355_v40, %v3354_v19 }
 0x33b   : > { %v2241_v46 = vadd.f32 %v2115_v17, %v1887_v20  ;;  %v2118_v27 = vadd.f32 %v3356_v33, %v4488_v14  ;;  %v1893_v20 = vld [vmem:[#allocation2 + $0x30] sm:$0xff] }
 0x33d   : > { %2273 = vst [vmem:[#allocation2] sm:$0xff] %v2241_v46  ;;  %v2242_v5 = vadd.f32 %v2118_v27, %v1888_v38  ;;  %v3357_v18 = vpop.f32.mrb[68].mxu1  ;;  %v1894_v38 = vld [vmem:[#allocation2 + $0x38] sm:$0xff] }
 0x33e   : > { %v3358_v30 = vpop.f32.mrb[69].mxu1 }
 0x33f   : > { %2274 = vst [vmem:[#allocation2 + $0x8] sm:$0xff] %v2242_v5  ;;  %v3359_v56 = vadd.f32 %v3358_v30, %v3357_v18  ;;  %v3360_v35 = vpop.f32.mrb[70].mxu1 }
 0x340   : > { %v3361_v13 = vpop.f32.mrb[71].mxu1 }
 0x341   : > { %v2123_v12 = vadd.f32 %v3359_v56, %v4491_v0  ;;  %v3362_v1 = vadd.f32 %v3361_v13, %v3360_v35  ;;  %v1895_v56 = vld [vmem:[#allocation2 + $0x40] sm:$0xff] }
 0x343   : > { %v2243_v7 = vadd.f32 %v2123_v12, %v1889_v23  ;;  %v2126_v29 = vadd.f32 %v3362_v1, %v4493_v45  ;;  %v1896_v12 = vld [vmem:[#allocation2 + $0x48] sm:$0xff] }
 0x345   : > { %2275 = vst [vmem:[#allocation2 + $0x10] sm:$0xff] %v2243_v7  ;;  %v2244_v9 = vadd.f32 %v2126_v29, %v1890_v37  ;;  %v3363_v60 = vpop.f32.mrb[72].mxu1 }
 0x346   : > { %v3364_v14 = vpop.f32.mrb[73].mxu1 }
 0x347   : > { %2276 = vst [vmem:[#allocation2 + $0x18] sm:$0xff] %v2244_v9  ;;  %v3365_v63 = vadd.f32 %v3364_v14, %v3363_v60  ;;  %v3366_v2 = vpop.f32.mrb[74].mxu1  ;;  %v1897_v60 = vld [vmem:[#allocation2 + $0x50] sm:$0xff] }
 0x348   : > { %v3367_v3 = vpop.f32.mrb[75].mxu1 }
 0x349   : > { %v2131_v49 = vadd.f32 %v3365_v63, %v4496_v61  ;;  %v3368_v47 = vadd.f32 %v3367_v3, %v3366_v2 }
 0x34b   : > { %v2245_v21 = vadd.f32 %v2131_v49, %v1891_v28  ;;  %v2134_v0 = vadd.f32 %v3368_v47, %v4498_v15  ;;  %v1898_v28 = vld [vmem:[#allocation2 + $0x58] sm:$0xff] }
 0x34d   : > { %2277 = vst [vmem:[#allocation2 + $0x20] sm:$0xff] %v2245_v21  ;;  %v2246_v54 = vadd.f32 %v2134_v0, %v1892_v10  ;;  %v3369_v11 = vpop.f32.mrb[76].mxu1  ;;  %v1899_v0 = vld [vmem:[#allocation2 + $0x60] sm:$0xff] }
 0x34e   : > { %v3370_v45 = vpop.f32.mrb[77].mxu1 }
 0x34f   : > { %2278 = vst [vmem:[#allocation2 + $0x28] sm:$0xff] %v2246_v54  ;;  %v3371_v57 = vadd.f32 %v3370_v45, %v3369_v11  ;;  %v3372_v19 = vpop.f32.mrb[78].mxu1 }
 0x350   : > { %v3373_v40 = vpop.f32.mrb[79].mxu1 }
 0x351   : > { %v2139_v17 = vadd.f32 %v3371_v57, %v4501_v22  ;;  %v3374_v33 = vadd.f32 %v3373_v40, %v3372_v19  ;;  %v1900_v57 = vld [vmem:[#allocation2 + $0x68] sm:$0xff] }
 0x353   : > { %v2247_v46 = vadd.f32 %v2139_v17, %v1893_v20  ;;  %v2142_v61 = vadd.f32 %v3374_v33, %v4503_v43 }
 0x355   : > { %2279 = vst [vmem:[#allocation2 + $0x30] sm:$0xff] %v2247_v46  ;;  %v2248_v27 = vadd.f32 %v2142_v61, %v1894_v38  ;;  %v3375_v5 = vpop.f32.mrb[80].mxu1  ;;  %v1901_v38 = vld [vmem:[#allocation2 + $0x70] sm:$0xff] }
 0x356   : > { %v3376_v15 = vpop.f32.mrb[81].mxu1 }
 0x357   : > { %2280 = vst [vmem:[#allocation2 + $0x38] sm:$0xff] %v2248_v27  ;;  %v3377_v18 = vadd.f32 %v3376_v15, %v3375_v5  ;;  %v3378_v30 = vpop.f32.mrb[82].mxu1  ;;  %v1902_v5 = vld [vmem:[#allocation2 + $0x78] sm:$0xff] }
 0x358   : > { %v3379_v35 = vpop.f32.mrb[83].mxu1 }
 0x359   : > { %v2147_v23 = vadd.f32 %v3377_v18, %v4505_v25  ;;  %v3380_v13 = vadd.f32 %v3379_v35, %v3378_v30 }
 0x35b   : > { %v2249_v1 = vadd.f32 %v2147_v23, %v1895_v56  ;;  %v2150_v22 = vadd.f32 %v3380_v13, %v4507_v62  ;;  %v1903_v23 = vld [vmem:[#allocation2 + $0x80] sm:$0xff] }
 0x35d   : > { %2281 = vst [vmem:[#allocation2 + $0x40] sm:$0xff] %v2249_v1  ;;  %v2250_v37 = vadd.f32 %v2150_v22, %v1896_v12  ;;  %v3381_v7 = vpop.f32.mrb[84].mxu1  ;;  %v1904_v22 = vld [vmem:[#allocation2 + $0x88] sm:$0xff] }
 0x35e   : > { %v3382_v43 = vpop.f32.mrb[85].mxu1 }
 0x35f   : > { %2282 = vst [vmem:[#allocation2 + $0x48] sm:$0xff] %v2250_v37  ;;  %v3383_v29 = vadd.f32 %v3382_v43, %v3381_v7  ;;  %v3384_v9 = vpop.f32.mrb[86].mxu1 }
 0x360   : > { %v3385_v14 = vpop.f32.mrb[87].mxu1 }
 0x361   : > { %v2155_v63 = vadd.f32 %v3383_v29, %v4509_v31  ;;  %v3386_v2 = vadd.f32 %v3385_v14, %v3384_v9 }
 0x363   : > { %v2251_v3 = vadd.f32 %v2155_v63, %v1897_v60  ;;  %v2158_v25 = vadd.f32 %v3386_v2, %v4511_v16  ;;  %v1905_v60 = vld [vmem:[#allocation2 + $0x90] sm:$0xff] }
 0x365   : > { %2283 = vst [vmem:[#allocation2 + $0x50] sm:$0xff] %v2251_v3  ;;  %v2252_v49 = vadd.f32 %v2158_v25, %v1898_v28  ;;  %v3387_v47 = vpop.f32.mrb[88].mxu1  ;;  %v1906_v28 = vld [vmem:[#allocation2 + $0x98] sm:$0xff] }
 0x366   : > { %v3388_v62 = vpop.f32.mrb[89].mxu1 }
 0x367   : > { %2284 = vst [vmem:[#allocation2 + $0x58] sm:$0xff] %v2252_v49  ;;  %v3389_v10 = vadd.f32 %v3388_v62, %v3387_v47  ;;  %v3390_v21 = vpop.f32.mrb[90].mxu1 }
 0x368   : > { %v3391_v54 = vpop.f32.mrb[91].mxu1 }
 0x369   : > { %v2163_v11 = vadd.f32 %v3389_v10, %v4513_v51  ;;  %v3392_v45 = vadd.f32 %v3391_v54, %v3390_v21  ;;  %v1907_v10 = vld [vmem:[#allocation2 + $0xa0] sm:$0xff] }
 0x36b   : > { %v2253_v19 = vadd.f32 %v2163_v11, %v1899_v0  ;;  %v2166_v31 = vadd.f32 %v3392_v45, %v4515_v55  ;;  %v1908_v11 = vld [vmem:[#allocation2 + $0xa8] sm:$0xff] }
 0x36d   : > { %2285 = vst [vmem:[#allocation2 + $0x60] sm:$0xff] %v2253_v19  ;;  %v2254_v20 = vadd.f32 %v2166_v31, %v1900_v57  ;;  %v3393_v40 = vpop.f32.mrb[92].mxu1 }
 0x36e   : > { %v3394_v16 = vpop.f32.mrb[93].mxu1 }
 0x36f   : > { %2286 = vst [vmem:[#allocation2 + $0x68] sm:$0xff] %v2254_v20  ;;  %v3395_v17 = vadd.f32 %v3394_v16, %v3393_v40  ;;  %v3396_v33 = vpop.f32.mrb[94].mxu1  ;;  %v1909_v40 = vld [vmem:[#allocation2 + $0xb0] sm:$0xff] }
 0x370   : > { %v3397_v46 = vpop.f32.mrb[95].mxu1 }
 0x371   : > { %v2171_v61 = vadd.f32 %v3395_v17, %v4517_v4  ;;  %v3398_v27 = vadd.f32 %v3397_v46, %v3396_v33 }
 0x373   : > { %v2255_v15 = vadd.f32 %v2171_v61, %v1901_v38  ;;  %v2174_v51 = vadd.f32 %v3398_v27, %v4519_v26  ;;  %v1910_v38 = vld [vmem:[#allocation2 + $0xb8] sm:$0xff] }
 0x375   : > { %2287 = vst [vmem:[#allocation2 + $0x70] sm:$0xff] %v2255_v15  ;;  %v2256_v18 = vadd.f32 %v2174_v51, %v1902_v5  ;;  %v3399_v30 = vpop.f32.mrb[96].mxu1  ;;  %v1911_v51 = vld [vmem:[#allocation2 + $0xc0] sm:$0xff] }
 0x376   : > { %v3400_v55 = vpop.f32.mrb[97].mxu1 }
 0x377   : > { %2288 = vst [vmem:[#allocation2 + $0x78] sm:$0xff] %v2256_v18  ;;  %v3401_v56 = vadd.f32 %v3400_v55, %v3399_v30  ;;  %v3402_v35 = vpop.f32.mrb[98].mxu1 }
 0x378   : > { %v3403_v13 = vpop.f32.mrb[99].mxu1 }
 0x379   : > { %v2179_v12 = vadd.f32 %v3401_v56, %v4521_v6  ;;  %v3404_v1 = vadd.f32 %v3403_v13, %v3402_v35  ;;  %v1912_v56 = vld [vmem:[#allocation2 + $0xc8] sm:$0xff] }
 0x37b   : > { %v2257_v37 = vadd.f32 %v2179_v12, %v1903_v23  ;;  %v2182_v4 = vadd.f32 %v3404_v1, %v4523_v58 }
 0x37d   : > { %2289 = vst [vmem:[#allocation2 + $0x80] sm:$0xff] %v2257_v37  ;;  %v2258_v7 = vadd.f32 %v2182_v4, %v1904_v22  ;;  %v3405_v43 = vpop.f32.mrb[100].mxu1  ;;  %v1913_v22 = vld [vmem:[#allocation2 + $0xd0] sm:$0xff] }
 0x37e   : > { %v3406_v26 = vpop.f32.mrb[101].mxu1 }
 0x37f   : > { %2290 = vst [vmem:[#allocation2 + $0x88] sm:$0xff] %v2258_v7  ;;  %v3407_v29 = vadd.f32 %v3406_v26, %v3405_v43  ;;  %v3408_v9 = vpop.f32.mrb[102].mxu1  ;;  %v1914_v43 = vld [vmem:[#allocation2 + $0xd8] sm:$0xff] }
 0x380   : > { %v3409_v14 = vpop.f32.mrb[103].mxu1 }
 0x381   : > { %v2187_v63 = vadd.f32 %v3407_v29, %v4525_v53  ;;  %v3410_v2 = vadd.f32 %v3409_v14, %v3408_v9 }
 0x383   : > { %v2259_v3 = vadd.f32 %v2187_v63, %v1905_v60  ;;  %v2190_v6 = vadd.f32 %v3410_v2, %v4527_v34  ;;  %v1915_v63 = vld [vmem:[#allocation2 + $0xe0] sm:$0xff] }
 0x385   : > { %2291 = vst [vmem:[#allocation2 + $0x90] sm:$0xff] %v2259_v3  ;;  %v2260_v25 = vadd.f32 %v2190_v6, %v1906_v28  ;;  %v3411_v49 = vpop.f32.mrb[104].mxu1  ;;  %v1916_v6 = vld [vmem:[#allocation2 + $0xe8] sm:$0xff] }
 0x386   : > { %v3412_v58 = vpop.f32.mrb[105].mxu1 }
 0x387   : > { %2292 = vst [vmem:[#allocation2 + $0x98] sm:$0xff] %v2260_v25  ;;  %v3413_v47 = vadd.f32 %v3412_v58, %v3411_v49  ;;  %v3414_v62 = vpop.f32.mrb[106].mxu1 }
 0x388   : > { %v3415_v21 = vpop.f32.mrb[107].mxu1 }
 0x389   : > { %v2195_v0 = vadd.f32 %v3413_v47, %v4529_v41  ;;  %v3416_v54 = vadd.f32 %v3415_v21, %v3414_v62 }
 0x38b   : > { %v2261_v45 = vadd.f32 %v2195_v0, %v1907_v10  ;;  %v2198_v53 = vadd.f32 %v3416_v54, %v4531_v39  ;;  %v1917_v10 = vld [vmem:[#allocation2 + $0xf0] sm:$0xff] }
 0x38d   : > { %2293 = vst [vmem:[#allocation2 + $0xa0] sm:$0xff] %v2261_v45  ;;  %v2262_v57 = vadd.f32 %v2198_v53, %v1908_v11  ;;  %v3417_v19 = vpop.f32.mrb[108].mxu1  ;;  %v1918_v11 = vld [vmem:[#allocation2 + $0xf8] sm:$0xff] }
 0x38e   : > { %v3418_v34 = vpop.f32.mrb[109].mxu1 }
 0x38f   : > { %2294 = vst [vmem:[#allocation2 + $0xa8] sm:$0xff] %v2262_v57  ;;  %v3419_v31 = vadd.f32 %v3418_v34, %v3417_v19  ;;  %v3420_v20 = vpop.f32.mrb[110].mxu1  ;;  %v3778_v57 = vmov (!%p3054_p12), 0   ;;  %v2342_v19 = vld [vmem:[%s4009_s18 + $0x8] sm:$0xff] (!%p3054_p12) }
 0x390   : > { %v3421_v16 = vpop.f32.mrb[111].mxu1  ;;  %3648 = vset.pattern.permute.xlu1 (!%p3054_p12), %v3778_v57  ;;  %3647 = vset.pattern.permute.xlu0 (!%p3054_p12), %v3778_v57  ;;  %v2346_v34 = vld [vmem:[%s4009_s18 + $0x28] sm:$0xff] (!%p3054_p12) }
 0x391   : > { %v2203_v17 = vadd.f32 %v3419_v31, %v4533_v52  ;;  %v3422_v33 = vadd.f32 %v3421_v16, %v3420_v20  ;;  %v2345_v31 = vld [vmem:[%s4009_s18 + $0x20] sm:$0xff] (!%p3054_p12)  ;;  %v2348_v20 = vld [vmem:[%s4009_s18 + $0x38] sm:$0xff] (!%p3054_p12)  ;;  %v2350_v16 = vld [vmem:[%s4009_s18 + $0x48] sm:$0xff] (!%p3054_p12) }
 0x393   : > { %v2263_v46 = vadd.f32 %v2203_v17, %v1909_v40  ;;  %v2206_v41 = vadd.f32 %v3422_v33, %v4535_v36  ;;  %v2347_v40 = vld [vmem:[%s4009_s18 + $0x30] sm:$0xff] (!%p3054_p12)  ;;  %v2349_v17 = vld [vmem:[%s4009_s18 + $0x40] sm:$0xff] (!%p3054_p12)  ;;  %v2352_v33 = vld [vmem:[%s4009_s18 + $0x58] sm:$0xff] (!%p3054_p12) }
 0x395   : > { %2295 = vst [vmem:[#allocation2 + $0xb0] sm:$0xff] %v2263_v46  ;;  %v2264_v61 = vadd.f32 %v2206_v41, %v1910_v38  ;;  %v3423_v27 = vpop.f32.mrb[112].mxu1  ;;  %v2351_v38 = vld [vmem:[%s4009_s18 + $0x50] sm:$0xff] (!%p3054_p12)  ;;  %v2354_v46 = vld [vmem:[%s4009_s18 + $0x68] sm:$0xff] (!%p3054_p12)  ;;  %v2353_v41 = vld [vmem:[%s4009_s18 + $0x60] sm:$0xff] (!%p3054_p12) }
 0x396   : > { %v3424_v39 = vpop.f32.mrb[113].mxu1 }
 0x397   : > { %2296 = vst [vmem:[#allocation2 + $0xb8] sm:$0xff] %v2264_v61  ;;  %v3425_v5 = vadd.f32 %v3424_v39, %v3423_v27  ;;  %v3426_v15 = vpop.f32.mrb[114].mxu1  ;;  %v2356_v61 = vld [vmem:[%s4009_s18 + $0x78] sm:$0xff] (!%p3054_p12)  ;;  %v2355_v27 = vld [vmem:[%s4009_s18 + $0x70] sm:$0xff] (!%p3054_p12)  ;;  %v2358_v39 = vld [vmem:[%s4009_s18 + $0x88] sm:$0xff] (!%p3054_p12) }
 0x398   : > { %v3427_v18 = vpop.f32.mrb[115].mxu1 }
 0x399   : > { %v2211_v30 = vadd.f32 %v3425_v5, %v4537_v48  ;;  %v3428_v55 = vadd.f32 %v3427_v18, %v3426_v15  ;;  %v2357_v5 = vld [vmem:[%s4009_s18 + $0x80] sm:$0xff] (!%p3054_p12)  ;;  %v2360_v15 = vld [vmem:[%s4009_s18 + $0x98] sm:$0xff] (!%p3054_p12)  ;;  %v2362_v18 = vld [vmem:[%s4009_s18 + $0xa8] sm:$0xff] (!%p3054_p12) }
 0x39b   : > { %v2265_v35 = vadd.f32 %v2211_v30, %v1911_v51  ;;  %v2214_v52 = vadd.f32 %v3428_v55, %v4539_v32  ;;  %v2359_v51 = vld [vmem:[%s4009_s18 + $0x90] sm:$0xff] (!%p3054_p12)  ;;  %v2361_v30 = vld [vmem:[%s4009_s18 + $0xa0] sm:$0xff] (!%p3054_p12)  ;;  %v2364_v55 = vld [vmem:[%s4009_s18 + $0xb8] sm:$0xff] (!%p3054_p12) }
 0x39d   : > { %2297 = vst [vmem:[#allocation2 + $0xc0] sm:$0xff] %v2265_v35  ;;  %v2266_v23 = vadd.f32 %v2214_v52, %v1912_v56  ;;  %v3429_v13 = vpop.f32.mrb[116].mxu1  ;;  %v2363_v56 = vld [vmem:[%s4009_s18 + $0xb0] sm:$0xff] (!%p3054_p12)  ;;  %v2366_v35 = vld [vmem:[%s4009_s18 + $0xc8] sm:$0xff] (!%p3054_p12)  ;;  %v2365_v52 = vld [vmem:[%s4009_s18 + $0xc0] sm:$0xff] (!%p3054_p12) }
 0x39e   : > { %v3430_v36 = vpop.f32.mrb[117].mxu1 }
 0x39f   : > { %2298 = vst [vmem:[#allocation2 + $0xc8] sm:$0xff] %v2266_v23  ;;  %v3431_v12 = vadd.f32 %v3430_v36, %v3429_v13  ;;  %v3432_v1 = vpop.f32.mrb[118].mxu1  ;;  %v2368_v23 = vld [vmem:[%s4009_s18 + $0xd8] sm:$0xff] (!%p3054_p12)  ;;  %v2367_v13 = vld [vmem:[%s4009_s18 + $0xd0] sm:$0xff] (!%p3054_p12)  ;;  %v2370_v36 = vld [vmem:[%s4009_s18 + $0xe8] sm:$0xff] (!%p3054_p12) }
 0x3a0   : > { %v3433_v37 = vpop.f32.mrb[119].mxu1 }
 0x3a1   : > { %v2219_v4 = vadd.f32 %v3431_v12, %v4541_v44  ;;  %v3434_v7 = vadd.f32 %v3433_v37, %v3432_v1  ;;  %v2369_v12 = vld [vmem:[%s4009_s18 + $0xe0] sm:$0xff] (!%p3054_p12)  ;;  %v2372_v1 = vld [vmem:[%s4009_s18 + $0xf8] sm:$0xff] (!%p3054_p12)  ;;  %v2311_v37 = vld [vmem:[#allocation2 + $0x10] sm:$0xff] (!%p3054_p12) }
 0x3a3   : > { %v2267_v26 = vadd.f32 %v2219_v4, %v1913_v22  ;;  %v2222_v48 = vadd.f32 %v3434_v7, %v4543_v50  ;;  %v2371_v22 = vld [vmem:[%s4009_s18 + $0xf0] sm:$0xff] (!%p3054_p12)  ;;  %v2309_v4 = vld [vmem:[#allocation2] sm:$0xff] (!%p3054_p12) }
 0x3a5   : > { %2299 = vst [vmem:[#allocation2 + $0xd0] sm:$0xff] %v2267_v26  ;;  %v2268_v29 = vadd.f32 %v2222_v48, %v1914_v43  ;;  %v3435_v9 = vpop.f32.mrb[120].mxu1  ;;  %v4621_v26 = vld [vmem:[%s4768_s4] ss:$0 sm:$0xff] (!%p3054_p12) }
 0x3a6   : > { %v3436_v32 = vpop.f32.mrb[121].mxu1 }
 0x3a7   : > { %2300 = vst [vmem:[#allocation2 + $0xd8] sm:$0xff] %v2268_v29  ;;  %v3437_v60 = vadd.f32 %v3436_v32, %v3435_v9  ;;  %v3438_v14 = vpop.f32.mrb[122].mxu1  ;;  %v2312_v9 = vld [vmem:[#allocation2 + $0x18] sm:$0xff] (!%p3054_p12)  ;;  %v2310_v32 = vld [vmem:[#allocation2 + $0x8] sm:$0xff] (!%p3054_p12) }
 0x3a8   : > { %v3439_v2 = vpop.f32.mrb[123].mxu1 }
 0x3a9   : > { %v2227_v28 = vadd.f32 %v3437_v60, %v4545_v8  ;;  %v3440_v3 = vadd.f32 %v3439_v2, %v3438_v14 }
 0x3ab   : > { %v2269_v25 = vadd.f32 %v2227_v28, %v1915_v63  ;;  %v2230_v44 = vadd.f32 %v3440_v3, %v4547_v42  ;;  %v2343_v42 = vld [vmem:[%s4009_s18 + $0x10] sm:$0xff] (!%p3054_p12) }
 0x3ac   : > { %2385 = vperm.xlu1 (!%p3054_p12), %3648, %v2343_v42  }
 0x3ad   : > { %2301 = vst [vmem:[#allocation2 + $0xe0] sm:$0xff] %v2269_v25  ;;  %v2270_v49 = vadd.f32 %v2230_v44, %v1916_v6  ;;  %v3441_v58 = vpop.f32.mrb[124].mxu1  ;;  %v2314_v6 = vld [vmem:[#allocation2 + $0x28] sm:$0xff] (!%p3054_p12)  ;;  %v2313_v25 = vld [vmem:[#allocation2 + $0x20] sm:$0xff] (!%p3054_p12) }
 0x3ae   : > { %v3442_v50 = vpop.f32.mrb[125].mxu1 }
 0x3af   : > { %2302 = vst [vmem:[#allocation2 + $0xe8] sm:$0xff] %v2270_v49  ;;  %v3443_v47 = vadd.f32 %v3442_v50, %v3441_v58  ;;  %v3444_v62 = vpop.f32.mrb[126].mxu1 }
 0x3b0   : > { %v3445_v21 = vpop.f32.mrb[127].mxu1 }
 0x3b1   : > { %v2235_v0 = vadd.f32 %v3443_v47, %v4549_v59  ;;  %v3446_v54 = vadd.f32 %v3445_v21, %v3444_v62  ;;  %2308 = sbr.rel (%p3054_p12) target bundleno = 1143 (0x477), region = 75  ;;  %v2341_v59 = vld [vmem:[%s4009_s18] sm:$0xff] (!%p3054_p12) }
 0x3b2   : > { %2375 = vperm.xlu0 (!%p3054_p12), %3647, %v2341_v59  }
 0x3b3   : > { %v2271_v45 = vadd.f32 %v2235_v0, %v1917_v10  ;;  %v2238_v8 = vadd.f32 %v3446_v54, %v4551_v24  ;;  %v2344_v24 = vld [vmem:[%s4009_s18 + $0x18] sm:$0xff] (!%p3054_p12) }
 0x3b4   : > { %2390 = vperm.xlu1 (!%p3054_p12), %3648, %v2344_v24  }
 0x3b5   : > { %2303 = vst [vmem:[#allocation2 + $0xf0] sm:$0xff] %v2271_v45  ;;  %v2272_v53 = vadd.f32 %v2238_v8, %v1918_v11  ;;  %v2316_v11 = vld [vmem:[#allocation2 + $0x38] sm:$0xff] (!%p3054_p12)  ;;  %v2315_v45 = vld [vmem:[#allocation2 + $0x30] sm:$0xff] (!%p3054_p12) }
 0x3b6   : > { %2380 = vperm.xlu0 (!%p3054_p12), %3647, %v2342_v19  }
 0x3b7   : > { %2304 = vst [vmem:[#allocation2 + $0xf8] sm:$0xff] %v2272_v53 }
 0x3b8   : > { %2400 = vperm.xlu1 %3648, %v2346_v34  }
 0x3ba   : > { %2395 = vperm.xlu0 %3647, %v2345_v31  }
 0x3bc   : > { %2410 = vperm.xlu1 %3648, %v2348_v20  }
 0x3be   : > { %2405 = vperm.xlu0 %3647, %v2347_v40   ;;  %v2318_v40 = vld [vmem:[#allocation2 + $0x48] sm:$0xff] }
 0x3c0   : > { %2420 = vperm.xlu1 %3648, %v2350_v16   ;;  %v2317_v16 = vld [vmem:[#allocation2 + $0x40] sm:$0xff] }
 0x3c2   : > { %2415 = vperm.xlu0 %3647, %v2349_v17  }
 0x3c4   : > { %2430 = vperm.xlu1 %3648, %v2352_v33  }
 0x3c6   : > { %2425 = vperm.xlu0 %3647, %v2351_v38  }
 0x3c8   : > { %2440 = vperm.xlu1 %3648, %v2354_v46  }
 0x3ca   : > { %2435 = vperm.xlu0 %3647, %v2353_v41  }
 0x3cc   : > { %2450 = vperm.xlu1 %3648, %v2356_v61  }
 0x3ce   : > { %2445 = vperm.xlu0 %3647, %v2355_v27  }
 0x3d0   : > { %2460 = vperm.xlu1 %3648, %v2358_v39  }
 0x3d2   : > { %2455 = vperm.xlu0 %3647, %v2357_v5  }
 0x3d4   : > { %2470 = vperm.xlu1 %3648, %v2360_v15   ;;  %v2320_v15 = vld [vmem:[#allocation2 + $0x58] sm:$0xff] }
 0x3d6   : > { %2465 = vperm.xlu0 %3647, %v2359_v51   ;;  %v2319_v51 = vld [vmem:[#allocation2 + $0x50] sm:$0xff] }
 0x3d8   : > { %2480 = vperm.xlu1 %3648, %v2362_v18  }
 0x3da   : > { %2475 = vperm.xlu0 %3647, %v2361_v30  }
 0x3dc   : > { %2490 = vperm.xlu1 %3648, %v2364_v55  }
 0x3de   : > { %2485 = vperm.xlu0 %3647, %v2363_v56  }
 0x3e0   : > { %2500 = vperm.xlu1 %3648, %v2366_v35  }
 0x3e2   : > { %2495 = vperm.xlu0 %3647, %v2365_v52  }
 0x3e4   : > { %2510 = vperm.xlu1 %3648, %v2368_v23  }
 0x3e6   : > { %2505 = vperm.xlu0 %3647, %v2367_v13  }
 0x3e8   : > { %2520 = vperm.xlu1 %3648, %v2370_v36  }
 0x3ea   : > { %2515 = vperm.xlu0 %3647, %v2369_v12   ;;  %v2322_v12 = vld [vmem:[#allocation2 + $0x68] sm:$0xff] }
 0x3ec   : > { %2530 = vperm.xlu1 %3648, %v2372_v1   ;;  %v2321_v1 = vld [vmem:[#allocation2 + $0x60] sm:$0xff] }
 0x3ee   : > { %2525 = vperm.xlu0 %3647, %v2371_v22  }
 0x42b   : > { %v2386_v7 = vpop.permute.xlu1 %2385 }
 0x42c   : > { %v2535_v48 = vmul.f32 %v2386_v7, %v2311_v37 }
 0x42e   : > { %v2574_v60 = vadd.f32 %v4621_v26, %v2535_v48 }
 0x430   : > { %v2606_v58 = vmax.f32 %v2574_v60, 0.0  ;;  %v2324_v60 = vld [vmem:[#allocation2 + $0x78] sm:$0xff] }
 0x431   : > { %v2376_v43 = vpop.permute.xlu0 %2375 }
 0x432   : > { %v2533_v29 = vmul.f32 %v2376_v43, %v2309_v4 }
 0x433   : > { %v2391_v63 = vpop.permute.xlu1 %2390 }
 0x434   : > { %v2572_v14 = vadd.f32 %v4621_v26, %v2533_v29  ;;  %v2536_v28 = vmul.f32 %v2391_v63, %v2312_v9 }
 0x435   : > { %v2381_v2 = vpop.permute.xlu0 %2380 }
 0x436   : > { %v2534_v3 = vmul.f32 %v2381_v2, %v2310_v32  ;;  %v2575_v44 = vadd.f32 %v4621_v26, %v2536_v28  ;;  %v2604_v50 = vmax.f32 %v2572_v14, 0.0  ;;  %v2323_v14 = vld [vmem:[#allocation2 + $0x70] sm:$0xff] }
 0x437   : > { %v2401_v47 = vpop.permute.xlu1 %2400 }
 0x438   : > { %v2573_v49 = vadd.f32 %v4621_v26, %v2534_v3  ;;  %v2607_v10 = vmax.f32 %v2575_v44, 0.0  ;;  %v2538_v0 = vmul.f32 %v2401_v47, %v2314_v6  ;;  %v2325_v47 = vld [vmem:[#allocation2 + $0x80] sm:$0xff] }
 0x439   : > { %v2396_v62 = vpop.permute.xlu0 %2395 }
 0x43a   : > { %v2605_v21 = vmax.f32 %v2573_v49, 0.0  ;;  %v2537_v54 = vmul.f32 %v2396_v62, %v2313_v25  ;;  %v3136_v8 = vpack.c.bf16 %v2607_v10, %v2606_v58  ;;  %v2577_v42 = vadd.f32 %v4621_v26, %v2538_v0 }
 0x43b   : > { %v2411_v57 = vpop.permute.xlu1 %2410 }
 0x43c   : > { %v3131_v53 = vpack.c.bf16 %v2605_v21, %v2604_v50  ;;  %v2576_v59 = vadd.f32 %v4621_v26, %v2537_v54  ;;  %3208 = vst [vmem:[%s4023_s29 + $0x8] sm:$0xff] %v3136_v8   ;;  %v2609_v19 = vmax.f32 %v2577_v42, 0.0  ;;  %v2540_v31 = vmul.f32 %v2411_v57, %v2316_v11  ;;  %v2326_v50 = vld [vmem:[#allocation2 + $0x88] sm:$0xff]  ;;  %v2328_v42 = vld [vmem:[#allocation2 + $0x98] sm:$0xff] }
 0x43d   : > { %v2406_v24 = vpop.permute.xlu0 %2405 }
 0x43e   : > { %3132 = vst [vmem:[%s4023_s29] sm:$0xff] %v3131_v53   ;;  %v2608_v34 = vmax.f32 %v2576_v59, 0.0  ;;  %v2539_v20 = vmul.f32 %v2406_v24, %v2315_v45  ;;  %v2579_v33 = vadd.f32 %v4621_v26, %v2540_v31  ;;  %v2327_v59 = vld [vmem:[#allocation2 + $0x90] sm:$0xff] }
 0x43f   : > { %v2421_v46 = vpop.permute.xlu1 %2420 }
 0x440   : > { %v3141_v17 = vpack.c.bf16 %v2609_v19, %v2608_v34  ;;  %v2578_v38 = vadd.f32 %v4621_v26, %v2539_v20  ;;  %v2611_v61 = vmax.f32 %v2579_v33, 0.0  ;;  %v2542_v39 = vmul.f32 %v2421_v46, %v2318_v40  ;;  %v2330_v33 = vld [vmem:[#allocation2 + $0xa8] sm:$0xff] }
 0x441   : > { %v2416_v41 = vpop.permute.xlu0 %2415 }
 0x442   : > { %3209 = vst [vmem:[%s4023_s29 + $0x10] sm:$0xff] %v3141_v17   ;;  %v2610_v27 = vmax.f32 %v2578_v38, 0.0  ;;  %v2541_v5 = vmul.f32 %v2416_v41, %v2317_v16  ;;  %v2581_v30 = vadd.f32 %v4621_v26, %v2542_v39  ;;  %v2329_v38 = vld [vmem:[#allocation2 + $0xa0] sm:$0xff] }
 0x443   : > { %v2431_v56 = vpop.permute.xlu1 %2430 }
 0x444   : > { %v3146_v18 = vpack.c.bf16 %v2611_v61, %v2610_v27  ;;  %v2580_v55 = vadd.f32 %v4621_v26, %v2541_v5  ;;  %v2613_v52 = vmax.f32 %v2581_v30, 0.0  ;;  %v2544_v13 = vmul.f32 %v2431_v56, %v2320_v15  ;;  %v2332_v30 = vld [vmem:[#allocation2 + $0xb8] sm:$0xff] }
 0x445   : > { %v2426_v35 = vpop.permute.xlu0 %2425 }
 0x446   : > { %3210 = vst [vmem:[%s4023_s29 + $0x18] sm:$0xff] %v3146_v18   ;;  %v2612_v23 = vmax.f32 %v2580_v55, 0.0  ;;  %v2543_v36 = vmul.f32 %v2426_v35, %v2319_v51  ;;  %v2583_v37 = vadd.f32 %v4621_v26, %v2544_v13  ;;  %v2331_v55 = vld [vmem:[#allocation2 + $0xb0] sm:$0xff] }
 0x447   : > { %v2441_v7 = vpop.permute.xlu1 %2440 }
 0x448   : > { %v3151_v22 = vpack.c.bf16 %v2613_v52, %v2612_v23  ;;  %v2582_v4 = vadd.f32 %v4621_v26, %v2543_v36  ;;  %v2615_v48 = vmax.f32 %v2583_v37, 0.0  ;;  %v2546_v9 = vmul.f32 %v2441_v7, %v2322_v12  ;;  %v2334_v37 = vld [vmem:[#allocation2 + $0xc8] sm:$0xff] }
 0x449   : > { %v2436_v43 = vpop.permute.xlu0 %2435 }
 0x44a   : > { %3211 = vst [vmem:[%s4023_s29 + $0x20] sm:$0xff] %v3151_v22   ;;  %v2614_v29 = vmax.f32 %v2582_v4, 0.0  ;;  %v2545_v32 = vmul.f32 %v2436_v43, %v2321_v1  ;;  %v2585_v2 = vadd.f32 %v4621_v26, %v2546_v9  ;;  %v2333_v4 = vld [vmem:[#allocation2 + $0xc0] sm:$0xff] }
 0x44b   : > { %v2451_v3 = vpop.permute.xlu1 %2450 }
 0x44c   : > { %v3156_v63 = vpack.c.bf16 %v2615_v48, %v2614_v29  ;;  %v2584_v28 = vadd.f32 %v4621_v26, %v2545_v32  ;;  %v2617_v25 = vmax.f32 %v2585_v2, 0.0  ;;  %v2548_v49 = vmul.f32 %v2451_v3, %v2324_v60  ;;  %v2336_v2 = vld [vmem:[#allocation2 + $0xd8] sm:$0xff] }
 0x44d   : > { %v2446_v6 = vpop.permute.xlu0 %2445 }
 0x44e   : > { %3212 = vst [vmem:[%s4023_s29 + $0x28] sm:$0xff] %v3156_v63   ;;  %v2616_v44 = vmax.f32 %v2584_v28, 0.0  ;;  %v2547_v58 = vmul.f32 %v2446_v6, %v2323_v14  ;;  %v2587_v10 = vadd.f32 %v4621_v26, %v2548_v49  ;;  %v2335_v28 = vld [vmem:[#allocation2 + $0xd0] sm:$0xff] }
 0x44f   : > { %v2461_v0 = vpop.permute.xlu1 %2460 }
 0x450   : > { %v3161_v62 = vpack.c.bf16 %v2617_v25, %v2616_v44  ;;  %v2586_v21 = vadd.f32 %v4621_v26, %v2547_v58  ;;  %v2619_v11 = vmax.f32 %v2587_v10, 0.0  ;;  %v2550_v8 = vmul.f32 %v2461_v0, %v2326_v50  ;;  %v2338_v10 = vld [vmem:[#allocation2 + $0xe8] sm:$0xff] }
 0x451   : > { %v2456_v54 = vpop.permute.xlu0 %2455 }
 0x452   : > { %3213 = vst [vmem:[%s4023_s29 + $0x30] sm:$0xff] %v3161_v62   ;;  %v2618_v45 = vmax.f32 %v2586_v21, 0.0  ;;  %v2549_v53 = vmul.f32 %v2456_v54, %v2325_v47  ;;  %v2589_v24 = vadd.f32 %v4621_v26, %v2550_v8  ;;  %v2337_v21 = vld [vmem:[#allocation2 + $0xe0] sm:$0xff] }
 0x453   : > { %v2471_v34 = vpop.permute.xlu1 %2470 }
 0x454   : > { %v3166_v57 = vpack.c.bf16 %v2619_v11, %v2618_v45  ;;  %v2588_v19 = vadd.f32 %v4621_v26, %v2549_v53  ;;  %v2621_v20 = vmax.f32 %v2589_v24, 0.0  ;;  %v2552_v16 = vmul.f32 %v2471_v34, %v2328_v42  ;;  %v2340_v24 = vld [vmem:[#allocation2 + $0xf8] sm:$0xff] }
 0x455   : > { %v2466_v31 = vpop.permute.xlu0 %2465 }
 0x456   : > { %3214 = vst [vmem:[%s4023_s29 + $0x38] sm:$0xff] %v3166_v57   ;;  %v2620_v40 = vmax.f32 %v2588_v19, 0.0  ;;  %v2551_v17 = vmul.f32 %v2466_v31, %v2327_v59  ;;  %v2591_v41 = vadd.f32 %v4621_v26, %v2552_v16  ;;  %v2339_v19 = vld [vmem:[#allocation2 + $0xf0] sm:$0xff] }
 0x457   : > { %v2481_v27 = vpop.permute.xlu1 %2480 }
 0x458   : > { %v3171_v46 = vpack.c.bf16 %v2621_v20, %v2620_v40  ;;  %v2590_v61 = vadd.f32 %v4621_v26, %v2551_v17  ;;  %v2623_v5 = vmax.f32 %v2591_v41, 0.0  ;;  %v2554_v51 = vmul.f32 %v2481_v27, %v2330_v33 }
 0x459   : > { %v2476_v39 = vpop.permute.xlu0 %2475 }
 0x45a   : > { %3215 = vst [vmem:[%s4023_s29 + $0x40] sm:$0xff] %v3171_v46   ;;  %v2622_v15 = vmax.f32 %v2590_v61, 0.0  ;;  %v2553_v18 = vmul.f32 %v2476_v39, %v2329_v38  ;;  %v2593_v35 = vadd.f32 %v4621_v26, %v2554_v51 }
 0x45b   : > { %v2491_v23 = vpop.permute.xlu1 %2490 }
 0x45c   : > { %v3176_v56 = vpack.c.bf16 %v2623_v5, %v2622_v15  ;;  %v2592_v52 = vadd.f32 %v4621_v26, %v2553_v18  ;;  %v2625_v36 = vmax.f32 %v2593_v35, 0.0  ;;  %v2556_v1 = vmul.f32 %v2491_v23, %v2332_v30 }
 0x45d   : > { %v2486_v13 = vpop.permute.xlu0 %2485 }
 0x45e   : > { %3216 = vst [vmem:[%s4023_s29 + $0x48] sm:$0xff] %v3176_v56   ;;  %v2624_v12 = vmax.f32 %v2592_v52, 0.0  ;;  %v2555_v22 = vmul.f32 %v2486_v13, %v2331_v55  ;;  %v2595_v43 = vadd.f32 %v4621_v26, %v2556_v1 }
 0x45f   : > { %v2501_v29 = vpop.permute.xlu1 %2500 }
 0x460   : > { %v3181_v7 = vpack.c.bf16 %v2625_v36, %v2624_v12  ;;  %v2594_v48 = vadd.f32 %v4621_v26, %v2555_v22  ;;  %v2627_v32 = vmax.f32 %v2595_v43, 0.0  ;;  %v2558_v14 = vmul.f32 %v2501_v29, %v2334_v37 }
 0x461   : > { %v2496_v9 = vpop.permute.xlu0 %2495 }
 0x462   : > { %3217 = vst [vmem:[%s4023_s29 + $0x50] sm:$0xff] %v3181_v7   ;;  %v2626_v60 = vmax.f32 %v2594_v48, 0.0  ;;  %v2557_v63 = vmul.f32 %v2496_v9, %v2333_v4  ;;  %v2597_v6 = vadd.f32 %v4621_v26, %v2558_v14 }
 0x463   : > { %v2511_v44 = vpop.permute.xlu1 %2510 }
 0x464   : > { %v3186_v3 = vpack.c.bf16 %v2627_v32, %v2626_v60  ;;  %v2596_v25 = vadd.f32 %v4621_v26, %v2557_v63  ;;  %v2629_v58 = vmax.f32 %v2597_v6, 0.0  ;;  %v2560_v47 = vmul.f32 %v2511_v44, %v2336_v2 }
 0x465   : > { %v2506_v49 = vpop.permute.xlu0 %2505 }
 0x466   : > { %3218 = vst [vmem:[%s4023_s29 + $0x58] sm:$0xff] %v3186_v3   ;;  %v2628_v50 = vmax.f32 %v2596_v25, 0.0  ;;  %v2559_v62 = vmul.f32 %v2506_v49, %v2335_v28  ;;  %v2599_v54 = vadd.f32 %v4621_v26, %v2560_v47 }
 0x467   : > { %v2521_v45 = vpop.permute.xlu1 %2520 }
 0x468   : > { %v3191_v0 = vpack.c.bf16 %v2629_v58, %v2628_v50  ;;  %v2598_v11 = vadd.f32 %v4621_v26, %v2559_v62  ;;  %v2631_v53 = vmax.f32 %v2599_v54, 0.0  ;;  %v2562_v59 = vmul.f32 %v2521_v45, %v2338_v10 }
 0x469   : > { %v2516_v8 = vpop.permute.xlu0 %2515 }
 0x46a   : > { %3219 = vst [vmem:[%s4023_s29 + $0x60] sm:$0xff] %v3191_v0   ;;  %v2630_v42 = vmax.f32 %v2598_v11, 0.0  ;;  %v2561_v57 = vmul.f32 %v2516_v8, %v2337_v21  ;;  %v2601_v31 = vadd.f32 %v4621_v26, %v2562_v59 }
 0x46b   : > { %v2531_v40 = vpop.permute.xlu1 %2530 }
 0x46c   : > { %v3196_v34 = vpack.c.bf16 %v2631_v53, %v2630_v42  ;;  %v2600_v20 = vadd.f32 %v4621_v26, %v2561_v57  ;;  %v2633_v17 = vmax.f32 %v2601_v31, 0.0  ;;  %v2564_v38 = vmul.f32 %v2531_v40, %v2340_v24 }
 0x46d   : > { %v2526_v16 = vpop.permute.xlu0 %2525 }
 0x46e   : > { %3220 = vst [vmem:[%s4023_s29 + $0x68] sm:$0xff] %v3196_v34   ;;  %v2632_v33 = vmax.f32 %v2600_v20, 0.0  ;;  %v2563_v46 = vmul.f32 %v2526_v16, %v2339_v19  ;;  %v2603_v61 = vadd.f32 %v4621_v26, %v2564_v38 }
 0x470   : > { %v3201_v41 = vpack.c.bf16 %v2633_v17, %v2632_v33  ;;  %v2602_v27 = vadd.f32 %v4621_v26, %v2563_v46  ;;  %v2635_v39 = vmax.f32 %v2603_v61, 0.0 }
 0x472   : > { %3221 = vst [vmem:[%s4023_s29 + $0x70] sm:$0xff] %v3201_v41   ;;  %v2634_v5 = vmax.f32 %v2602_v27, 0.0 }
 0x474   : > { %v3206_v15 = vpack.c.bf16 %v2635_v39, %v2634_v5 }
 0x476   : > { %3222 = vst [vmem:[%s4023_s29 + $0x78] sm:$0xff] %v3206_v15  }
 0x477 PF: > { %s3127_s18 = sshll.u32 %s3761_s11, 11  ;;  %s4769_s28 = sld [smem:[#allocation18_spill]] }
 0x478   : > { %s2810_s21 = sshll.u32 %s4023_s29, 4  ;;  %s4770_s8 = sand.u32 1, %s3741_s30   ;;  %s4678_s21 = int_to_ptr.vmem [resolvable:$true] %s2810_s21 }
 0x479   : > { %s4682_s22 = scalar_lea.sflag [#allocation7], %s4770_s8  ;;  %s3661_s26 = scalar_lea.vmem %s4678_s21, 2048 }
 0x47a   : > { %p3662_p13 = scmp.ne.s32.totalorder %s4678_s21, %s3661_s26  ;;  %s3779_s11 = smov [#allocation6]  }
 0x47b   : > { %s3665_s23 = sshll.u32 %s3779_s11, 4  ;;  %s3666_s23 = int_to_ptr.vmem [resolvable:$false] %s3665_s23 }
 0x47c   : > { %p3663_p1 = pnand %p3662_p13, %p3900_p0  ;;  %s3667_s1 = scalar_lea.vmem %s3666_s23, 4096 }
 0x47d   : > { %s4675_s15 = scalar_lea.hbm %s4769_s28, %s3127_s18  ;;  %p3668_p4 = scmp.lt.s32.totalorder %s4678_s21, %s3666_s23 }
 0x47e   : > { %p3664_p3 = pneg %p3663_p1  ;;  %p3669_p5 = scmp.lt.s32.totalorder %s3667_s1, %s3661_s26 }
 0x480   : > { %p3670_p6 = por %p3669_p5, %p3668_p4 }
 0x482   : > { %p3671_p7 = pnand %p3670_p6, %p3664_p3 }
 0x484   : > { %3674 = shalt.err (!%p3671_p7)
}
 0x485   : > { %s3675_s29 = scalar_lea.hbm %s4675_s15, 2048  ;;  %s3679_s17 = scalar_lea.hbm %s4769_s28, 8192 }
 0x486   : > { %p3676_p8 = scmp.ne.s32.totalorder %s4675_s15, %s3675_s29  ;;  %p3680_p11 = scmp.lt.u32.totalorder %s4675_s15, %s4769_s28 }
 0x487   : > { %p3681_p12 = scmp.lt.u32.totalorder %s3679_s17, %s3675_s29  ;;  %p3683_p1 = scmp.lt.u32.totalorder %s3675_s29, %s4675_s15 }
 0x488   : > { %p3677_p9 = pnand %p3676_p8, %p3900_p0 }
 0x489   : > { %p3682_p13 = por %p3681_p12, %p3680_p11 }
 0x48a   : > { %p3678_p10 = pneg %p3677_p9 }
 0x48b   : > { %p3684_p3 = por %p3683_p1, %p3682_p13 }
 0x48d   : > { %p3685_p4 = pnand %p3684_p3, %p3678_p10 }
 0x48f   : > { %3688 = shalt.err (!%p3685_p4)
}
 0x490   : > { %s3780_s12 = smov 64   ;;  %s3781_s4 = smov 4  }
 0x491   : > { %3447 = dma.vmem_to_hbm [thread:$0]  (%p3900_p0), %s4678_s21, 2048, %s4675_s15, %s4682_s22, %s3780_s12, %s3780_s12, %s3781_s4  }
 0x492 PF: > { %s4771_s18 = sld [smem:[#allocation10_spill]]  ;;  %p3453_p5 = scmp.ge.s32.totalorder %s3773_s14, 2 }
 0x494   : > { %p3450_p6 = pnand %p3453_p5, %p3908_p2 }
 0x498   : > { %s2825_s7 = sand.u32 1, %s4771_s18  }
 0x499   : > { %s2826_s20 = scalar_lea.sflag [#allocation7], %s2825_s7 }
 0x49a   : > { %3732 = dma.done.wait (!%p3450_p6), %s2826_s20, 2048  }
 0x49b   : > { %3734 = vsyncadd (!%p3450_p6), %s2826_s20, 4294965248  ;;  %s26_s14 = sadd.s32 1, %s3773_s14   ;;  %s4772_s24 = sld [smem:[#allocation15_spill]] }
 0x49c   : > { %p23_p7 = scmp.ge.s32.totalorder %s26_s14, 10   ;;  %s4773_s10 = sld [smem:[#allocation11_spill]] }
 0x49d   : > { %s4774_s11 = sld [smem:[#allocation12_spill]]  ;;  %s4775_s12 = sld [smem:[#allocation13_spill]] }
 0x49e   : > { %s4776_s13 = sld [smem:[#allocation14_spill]]  ;;  %s4777_s29 = smov %s3741_s30 }
 0x49f   : > { %s4778_s30 = smov %s3745_s0  ;;  %s4779_s0 = smov %s3905_s25 }
 0x4a0   : > { %s4780_s8 = smov %s3753_s9  ;;  %25 = sbr.rel (!%p23_p7) target bundleno = 22 (0x16), region = 124 }
 0x4a1   : > { %s4781_s9 = smov %s4772_s24 }
 0x4a7   :  { %2831 = vsyncpa [#allocation7], 1 }
 0x4a8   :  { %2833 = vsyncpa [#allocation7 + $0x1], 1 }

</bundles_post_ra>
